<compile_context>
chip_gen: v5e
topology: v5e:2x2
jax: 0.10.0
libtpu: 0.0.40
codegen_flags: <defaults>
</compile_context>

<pallas_src>
import functools

import jax
import jax.numpy as jnp
from jax.experimental import pallas as pl
from jax.experimental.pallas import tpu as pltpu

NEG_SLOPE = 0.2
MASK_VAL = 1e30  # finite additive mask (avoids inf-inf NaNs); underflows to exp()==0


def _gat_net_kernel(h_ref, adj_ref, he_ref, w_ref, b_ref, out_ref, agg_ref, *,
                    layer_cfg, wg_off, bg_off, f_out, negative_slope, mxu_dtype):
    """One graph (one grid step): all GATConv layers + global-attention readout.

    h_ref   (N, Fin0)   embedded node features for this graph
    adj_ref (N, N)      dense adjacency, adj[dst, src] in {0,1}
    he_ref  (N, 1)      1.0 where dst has in-degree > 0 (host precomputed)
    w_ref   (maxFin, Wc) packed [W|wr|wl] per layer + wg column (static offsets)
    b_ref   (1, Bc)     packed per-layer biases + gate bias
    out_ref (1, F_out)  graph vector
    agg_ref (N, maxHD)  VMEM scratch: per-head aggregation written in place
    """
    adj = adj_ref[...]                       # only resident O(N^2) buffer
    has_edge = he_ref[...] > 0.0             # (N, 1)

    h = h_ref[...]                           # (N, Fin0) f32
    for (fin, H, D, w_off, b_off) in layer_cfg:            # unrolled at trace time
        HD = H * D
        # One fused MXU matmul: [feat | er | elN] = h @ [W | wr | wl]
        w_blk = w_ref[0:fin, w_off:w_off + HD + 2 * H]
        proj = jnp.dot(h.astype(mxu_dtype), w_blk.astype(mxu_dtype),
                       preferred_element_type=jnp.float32)  # (N, HD+2H)
        feat = proj[:, 0:HD]                                 # (N, HD)
        er = proj[:, HD:HD + H]                              # (N_dst, H)
        el = proj[:, HD + H:HD + 2 * H].T                    # (H, N_src) one small transpose

        for hh in range(H):                                  # H <= 4, unrolled
            e = er[:, hh:hh + 1] + el[hh:hh + 1, :]          # (N_dst, N_src)
            e = jnp.maximum(e, negative_slope * e)           # leaky_relu (single max)
            e = jnp.where(adj > 0.0, e, -MASK_VAL)           # mask non-edges (single select)
            m = jnp.max(e, axis=-1, keepdims=True)
            p = jnp.exp(e - m)
            inv = pl.reciprocal(jnp.sum(p, axis=-1, keepdims=True), approx=True)
            alpha = p * inv                                  # softmax over incoming edges
            # Write this head's aggregation directly into scratch (no concatenate).
            agg_ref[:, hh * D:(hh + 1) * D] = jnp.dot(
                alpha.astype(mxu_dtype),
                feat[:, hh * D:(hh + 1) * D].astype(mxu_dtype),
                preferred_element_type=jnp.float32)
        rst = agg_ref[:, 0:HD]                               # (N, HD) head-concatenated
        # Zero-in-degree dst nodes: aggregation is zero -> output becomes relu(bias).
        rst = jnp.where(has_edge, rst, 0.0)
        h = jnp.maximum(rst + b_ref[0:1, b_off:b_off + HD], 0.0)   # bias + relu

    # GlobalAttentionPooling: gate = softmax_nodes(sigmoid(h @ wg + bg)); out = sum gate*h
    wg = w_ref[0:f_out, wg_off:wg_off + 1]                   # (F_out, 1)
    gate = jnp.dot(h, wg, preferred_element_type=jnp.float32) + b_ref[0:1, bg_off:bg_off + 1]
    gate = jax.nn.sigmoid(gate)                              # (N, 1)
    mg = jnp.max(gate, axis=0, keepdims=True)
    pg = jnp.exp(gate - mg)
    gate = pg * pl.reciprocal(jnp.sum(pg, axis=0, keepdims=True), approx=True)
    out_ref[...] = jnp.sum(gate * h, axis=0, keepdims=True)  # (1, F_out)


@functools.partial(jax.jit, static_argnames=("negative_slope", "mxu_dtype"))
def gat_forward_batched(x, u, v, edge_types, embed_table, layer_params, wg, bg,
                        negative_slope=NEG_SLOPE, mxu_dtype=jnp.float32):
    """Batched GAT forward: x (B,N,1) ints, u/v (B,E) edge endpoints (u -> v).

    layer_params: list of (W (H,Fin,D), attn_l (H,1,D), attn_r (H,1,D), bias (H,1,D)).
    Returns (B, F_out) graph vectors. edge_types is unused by the reference forward.
    """
    B, N = x.shape[0], x.shape[1]
    fin0 = layer_params[0][0].shape[1]

    # ---- host-side glue (fused into the same jit) ----
    h0 = jnp.take(embed_table, x[:, :, 0], axis=0).astype(jnp.float32)     # (B, N, Fin0)
    bidx = jnp.arange(B)[:, None]
    # dgl.graph((u, v)): edges u -> v  => adj[dst=v, src=u] = 1.
    # TODO(synk): duplicate (u,v) edges collapse to a single edge here; DGL edge_softmax
    # would weight multi-edges separately.
    adj = jnp.zeros((B, N, N), jnp.float32).at[bidx, v, u].set(1.0)
    indeg = jnp.zeros((B, N), jnp.float32).at[bidx, v].add(1.0)
    has_edge = (indeg > 0).astype(jnp.float32)[:, :, None]                 # (B, N, 1)

    # ---- pack all weights into two slabs (few dense DMAs instead of many tiny ones) ----
    fins = [p[0].shape[1] for p in layer_params] + [wg.shape[0]]
    max_fin = max(fins)
    layer_cfg, w_blocks, b_blocks = [], [], []
    w_off = b_off = 0
    for (W, al, ar, b) in layer_params:
        H, fin, D = W.shape
        HD = H * D
        w_flat = jnp.transpose(W, (1, 0, 2)).reshape(fin, HD)     # heads concatenated
        wr = jnp.einsum("hfd,hd->fh", W, ar[:, 0, :])             # er  = h @ wr   (Fin, H)
        wl = jnp.einsum("hfd,hd->fh", W, al[:, 0, :])             # elN = h @ wl   (Fin, H)
        blk = jnp.concatenate([w_flat, wr, wl], axis=1)           # (fin, HD+2H)
        w_blocks.append(jnp.pad(blk, ((0, max_fin - fin), (0, 0))))
        b_blocks.append(b.reshape(1, HD).astype(jnp.float32))
        layer_cfg.append((int(fin), int(H), int(D), int(w_off), int(b_off)))
        w_off += HD + 2 * H
        b_off += HD
    f_out = layer_params[-1][0].shape[0] * layer_params[-1][0].shape[2]    # H_last * D_last
    wg_off = w_off
    w_blocks.append(jnp.pad(wg.astype(jnp.float32), ((0, max_fin - wg.shape[0]), (0, 0))))
    bg_off = b_off
    b_blocks.append(bg.reshape(1, 1).astype(jnp.float32))
    wslab = jnp.concatenate(w_blocks, axis=1)                              # (max_fin, Wc)
    bslab = jnp.concatenate(b_blocks, axis=1)                              # (1, Bc)
    max_hd = max(cfg[1] * cfg[2] for cfg in layer_cfg)

    # ---- rough cost estimate so XLA schedules around the custom call ----
    flops = trans = 0
    for (fin, H, D, _, _) in layer_cfg:
        HD = H * D
        flops += 2 * N * fin * (HD + 2 * H) + H * (2 * N * N * D + 8 * N * N)
        trans += H * N * N
    flops += 2 * N * f_out + 4 * N
    trans += 2 * N
    cost = pl.CostEstimate(
        flops=B * flops, transcendentals=B * trans,
        bytes_accessed=4 * (B * (N * fin0 + N * N + N + f_out) + wslab.size + bslab.size))

    grid_spec = pltpu.PrefetchScalarGridSpec(
        num_scalar_prefetch=0,
        grid=(B,),
        in_specs=[
            pl.BlockSpec((None, N, fin0), lambda g: (g, 0, 0)),   # h0, per graph
            pl.BlockSpec((None, N, N), lambda g: (g, 0, 0)),      # adj, per graph
            pl.BlockSpec((None, N, 1), lambda g: (g, 0, 0)),      # has_edge, per graph
            pl.BlockSpec(wslab.shape, lambda g: (0, 0)),          # weight slab (shared)
            pl.BlockSpec(bslab.shape, lambda g: (0, 0)),          # bias slab (shared)
        ],
        out_specs=pl.BlockSpec((None, 1, f_out), lambda g: (g, 0, 0)),
        scratch_shapes=[pltpu.VMEM((N, max_hd), jnp.float32)],
    )
    kernel = functools.partial(
        _gat_net_kernel, layer_cfg=tuple(layer_cfg), wg_off=int(wg_off), bg_off=int(bg_off),
        f_out=int(f_out), negative_slope=negative_slope, mxu_dtype=mxu_dtype)
    out = pl.pallas_call(
        kernel,
        out_shape=jax.ShapeDtypeStruct((B, 1, f_out), jnp.float32),
        grid_spec=grid_spec,
        compiler_params=pltpu.CompilerParams(dimension_semantics=("parallel",)),
        cost_estimate=cost,
    )(h0, adj, has_edge, wslab, bslab)
    return out[:, 0, :]


def gat_forward(inputs, embed_table, layer_params, wg, bg, negative_slope=NEG_SLOPE):
    """Single-graph forward matching the torch module signature. Returns (1, F_out)."""
    x, u, v, edge_types = inputs
    return gat_forward_batched(x[None], u[None], v[None], edge_types[None],
                               embed_table, layer_params, wg, bg,
                               negative_slope=negative_slope)


if __name__ == "__main__":
    # Small, forward-consistent configuration (num_layers=3):
    tokens_size, in_dim, out_dim = 50, 16, 16
    hidden_dims, num_heads = [8, 8], [4, 4]
    B, N, E = 3, 16, 40

    key = jax.random.PRNGKey(0)
    keys = jax.random.split(key, 24)

    x = jax.random.randint(keys[0], (B, N, 1), 0, tokens_size)       # token ids per node
    u = jax.random.randint(keys[1], (B, E), 0, N)                    # edge sources
    v = jax.random.randint(keys[2], (B, E), 0, N)                    # edge destinations
    edge_types = jax.random.randint(keys[3], (B, E), 0, 3)           # unused in forward

    embed_table = 0.1 * jax.random.normal(keys[4], (tokens_size, in_dim), jnp.float32)

    # layer configs: (Fin, D_per_head, H)
    layer_shapes = [
        (in_dim, hidden_dims[0], num_heads[0]),
        (hidden_dims[0] * num_heads[0], hidden_dims[1], num_heads[1]),
        (hidden_dims[1] * num_heads[1], out_dim, 1),
    ]
    layer_params = []
    k = 5
    for (fin, d, h) in layer_shapes:
        W = 0.1 * jax.random.normal(keys[k], (h, fin, d), jnp.float32); k += 1
        al = 0.1 * jax.random.normal(keys[k], (h, 1, d), jnp.float32); k += 1
        ar = 0.1 * jax.random.normal(keys[k], (h, 1, d), jnp.float32); k += 1
        b = jnp.zeros((h, 1, d), jnp.float32)                        # DGL zero-inits GATConv bias
        layer_params.append((W, al, ar, b))

    wg = 0.1 * jax.random.normal(keys[k], (out_dim, 1), jnp.float32); k += 1
    bg = jnp.zeros((1, 1), jnp.float32)

    # TODO(synk): feat_drop / attn_drop are training-time dropout; eval-mode identity here.
    out = gat_forward_batched(x, u, v, edge_types, embed_table, layer_params, wg, bg)
    jax.block_until_ready(out)
    assert out.shape == (B, out_dim) and out.dtype == jnp.float32
    print("KERNEL_OK")
</pallas_src>

<mosaic_0001>
module attributes {stable_mosaic.version = 11 : i64} {
  func.func @_gat_net_kernel(%arg0: i32, %arg1: memref<1x16x16xf32, #tpu.memory_space<vmem>>, %arg2: memref<1x16x16xf32, #tpu.memory_space<vmem>>, %arg3: memref<1x16x1xf32, #tpu.memory_space<vmem>>, %arg4: memref<32x99xf32, #tpu.memory_space<vmem>>, %arg5: memref<1x81xf32, #tpu.memory_space<vmem>>, %arg6: memref<1x1x16xf32, #tpu.memory_space<vmem>>, %arg7: memref<16x32xf32, #tpu.memory_space<vmem>>) attributes {dimension_semantics = [#tpu.dimension_semantics<parallel>], iteration_bounds = array<i64: 3>, scalar_prefetch = 0 : i64, scratch_operands = 1 : i64, tpu.core_type = #tpu.core_type<tc>, window_params = [{transform_indices = @transform_0, window_bounds = array<i64: 1, 16, 16>}, {transform_indices = @transform_1, window_bounds = array<i64: 1, 16, 16>}, {transform_indices = @transform_2, window_bounds = array<i64: 1, 16, 1>}, {pipeline_mode = #tpu.pipeline_mode<synchronous>, transform_indices = @transform_3, window_bounds = array<i64: 32, 99>}, {pipeline_mode = #tpu.pipeline_mode<synchronous>, transform_indices = @transform_4, window_bounds = array<i64: 1, 81>}, {transform_indices = @transform_5, window_bounds = array<i64: 1, 1, 16>}]} {
    %c0 = arith.constant 0 : index
    %c0_0 = arith.constant 0 : index
    %c0_1 = arith.constant 0 : index
    %0 = vector.load %arg2[%c0, %c0_0, %c0_1] : memref<1x16x16xf32, #tpu.memory_space<vmem>>, vector<1x16x16xf32>
    %1 = vector.shape_cast %0 : vector<1x16x16xf32> to vector<16x16xf32>
    %c0_2 = arith.constant 0 : index
    %c0_3 = arith.constant 0 : index
    %c0_4 = arith.constant 0 : index
    %2 = vector.load %arg3[%c0_2, %c0_3, %c0_4] : memref<1x16x1xf32, #tpu.memory_space<vmem>>, vector<1x16x1xf32>
    %3 = vector.shape_cast %2 : vector<1x16x1xf32> to vector<16x1xf32>
    %cst = arith.constant 0.000000e+00 : f32
    %4 = vector.broadcast %cst : f32 to vector<16x1xf32>
    %5 = arith.cmpf ogt, %3, %4 : vector<16x1xf32>
    %c0_5 = arith.constant 0 : index
    %c0_6 = arith.constant 0 : index
    %c0_7 = arith.constant 0 : index
    %6 = vector.load %arg1[%c0_5, %c0_6, %c0_7] : memref<1x16x16xf32, #tpu.memory_space<vmem>>, vector<1x16x16xf32>
    %7 = vector.shape_cast %6 : vector<1x16x16xf32> to vector<16x16xf32>
    %c0_8 = arith.constant 0 : index
    %c0_9 = arith.constant 0 : index
    %8 = vector.load %arg4[%c0_8, %c0_9] : memref<32x99xf32, #tpu.memory_space<vmem>>, vector<16x40xf32>
    %cst_10 = arith.constant dense<0.000000e+00> : vector<16x40xf32>
    %9 = tpu.matmul %7, %8, %cst_10 {dimension_numbers = #tpu.dot_dimension_numbers<[1], [0], [0], [1], [0, 0, 1, 1], [], []>} : vector<16x16xf32>, vector<16x40xf32>, vector<16x40xf32> -> vector<16x40xf32>
    %10 = vector.extract_strided_slice %9 {offsets = [0, 0], sizes = [16, 32], strides = [1, 1]} : vector<16x40xf32> to vector<16x32xf32>
    %11 = vector.extract_strided_slice %9 {offsets = [0, 32], sizes = [16, 4], strides = [1, 1]} : vector<16x40xf32> to vector<16x4xf32>
    %12 = vector.extract_strided_slice %9 {offsets = [0, 36], sizes = [16, 4], strides = [1, 1]} : vector<16x40xf32> to vector<16x4xf32>
    %13 = tpu.transpose %12, [1, 0] : vector<16x4xf32> -> vector<4x16xf32>
    %14 = vector.extract_strided_slice %11 {offsets = [0, 0], sizes = [16, 1], strides = [1, 1]} : vector<16x4xf32> to vector<16x1xf32>
    %15 = vector.extract_strided_slice %13 {offsets = [0, 0], sizes = [1, 16], strides = [1, 1]} : vector<4x16xf32> to vector<1x16xf32>
    %16 = vector.broadcast %14 : vector<16x1xf32> to vector<16x16xf32>
    %17 = vector.broadcast %15 : vector<1x16xf32> to vector<16x16xf32>
    %18 = arith.addf %16, %17 : vector<16x16xf32>
    %cst_11 = arith.constant 2.000000e-01 : f32
    %19 = vector.broadcast %cst_11 : f32 to vector<16x16xf32>
    %20 = arith.mulf %19, %18 : vector<16x16xf32>
    %21 = arith.maximumf %18, %20 : vector<16x16xf32>
    %cst_12 = arith.constant 0.000000e+00 : f32
    %22 = vector.broadcast %cst_12 : f32 to vector<16x16xf32>
    %23 = arith.cmpf ogt, %1, %22 : vector<16x16xf32>
    %cst_13 = arith.constant -1.000000e+30 : f32
    %24 = vector.broadcast %cst_13 : f32 to vector<16x16xf32>
    %25 = arith.select %23, %21, %24 : vector<16x16xi1>, vector<16x16xf32>
    %cst_14 = arith.constant dense<0xFF800000> : vector<16xf32>
    %26 = vector.multi_reduction <maximumf>, %25, %cst_14 [1] : vector<16x16xf32> to vector<16xf32>
    %27 = vector.shape_cast %26 : vector<16xf32> to vector<16x1xf32>
    %28 = vector.broadcast %27 : vector<16x1xf32> to vector<16x16xf32>
    %29 = arith.subf %25, %28 : vector<16x16xf32>
    %30 = math.exp %29 : vector<16x16xf32>
    %cst_15 = arith.constant dense<0.000000e+00> : vector<16xf32>
    %31 = vector.multi_reduction <add>, %30, %cst_15 [1] : vector<16x16xf32> to vector<16xf32>
    %32 = vector.shape_cast %31 : vector<16xf32> to vector<16x1xf32>
    %33 = tpu.reciprocal %32 {approx = true} : vector<16x1xf32> -> vector<16x1xf32>
    %34 = vector.broadcast %33 : vector<16x1xf32> to vector<16x16xf32>
    %35 = arith.mulf %30, %34 : vector<16x16xf32>
    %36 = vector.extract_strided_slice %10 {offsets = [0, 0], sizes = [16, 8], strides = [1, 1]} : vector<16x32xf32> to vector<16x8xf32>
    %cst_16 = arith.constant dense<0.000000e+00> : vector<16x8xf32>
    %37 = tpu.matmul %35, %36, %cst_16 {dimension_numbers = #tpu.dot_dimension_numbers<[1], [0], [0], [1], [0, 0, 1, 1], [], []>} : vector<16x16xf32>, vector<16x8xf32>, vector<16x8xf32> -> vector<16x8xf32>
    %c0_17 = arith.constant 0 : index
    %c0_18 = arith.constant 0 : index
    %38 = vector.load %arg7[%c0_17, %c0_18] : memref<16x32xf32, #tpu.memory_space<vmem>>, vector<16x8xf32>
    tpu.vector_store %arg7[%c0_17, %c0_18], %37 {strides = array<i32>} : memref<16x32xf32, #tpu.memory_space<vmem>>, vector<16x8xf32>,
    %39 = vector.extract_strided_slice %11 {offsets = [0, 1], sizes = [16, 1], strides = [1, 1]} : vector<16x4xf32> to vector<16x1xf32>
    %40 = vector.extract_strided_slice %13 {offsets = [1, 0], sizes = [1, 16], strides = [1, 1]} : vector<4x16xf32> to vector<1x16xf32>
    %41 = vector.broadcast %39 : vector<16x1xf32> to vector<16x16xf32>
    %42 = vector.broadcast %40 : vector<1x16xf32> to vector<16x16xf32>
    %43 = arith.addf %41, %42 : vector<16x16xf32>
    %cst_19 = arith.constant 2.000000e-01 : f32
    %44 = vector.broadcast %cst_19 : f32 to vector<16x16xf32>
    %45 = arith.mulf %44, %43 : vector<16x16xf32>
    %46 = arith.maximumf %43, %45 : vector<16x16xf32>
    %cst_20 = arith.constant 0.000000e+00 : f32
    %47 = vector.broadcast %cst_20 : f32 to vector<16x16xf32>
    %48 = arith.cmpf ogt, %1, %47 : vector<16x16xf32>
    %cst_21 = arith.constant -1.000000e+30 : f32
    %49 = vector.broadcast %cst_21 : f32 to vector<16x16xf32>
    %50 = arith.select %48, %46, %49 : vector<16x16xi1>, vector<16x16xf32>
    %cst_22 = arith.constant dense<0xFF800000> : vector<16xf32>
    %51 = vector.multi_reduction <maximumf>, %50, %cst_22 [1] : vector<16x16xf32> to vector<16xf32>
    %52 = vector.shape_cast %51 : vector<16xf32> to vector<16x1xf32>
    %53 = vector.broadcast %52 : vector<16x1xf32> to vector<16x16xf32>
    %54 = arith.subf %50, %53 : vector<16x16xf32>
    %55 = math.exp %54 : vector<16x16xf32>
    %cst_23 = arith.constant dense<0.000000e+00> : vector<16xf32>
    %56 = vector.multi_reduction <add>, %55, %cst_23 [1] : vector<16x16xf32> to vector<16xf32>
    %57 = vector.shape_cast %56 : vector<16xf32> to vector<16x1xf32>
    %58 = tpu.reciprocal %57 {approx = true} : vector<16x1xf32> -> vector<16x1xf32>
    %59 = vector.broadcast %58 : vector<16x1xf32> to vector<16x16xf32>
    %60 = arith.mulf %55, %59 : vector<16x16xf32>
    %61 = vector.extract_strided_slice %10 {offsets = [0, 8], sizes = [16, 8], strides = [1, 1]} : vector<16x32xf32> to vector<16x8xf32>
    %cst_24 = arith.constant dense<0.000000e+00> : vector<16x8xf32>
    %62 = tpu.matmul %60, %61, %cst_24 {dimension_numbers = #tpu.dot_dimension_numbers<[1], [0], [0], [1], [0, 0, 1, 1], [], []>} : vector<16x16xf32>, vector<16x8xf32>, vector<16x8xf32> -> vector<16x8xf32>
    %c0_25 = arith.constant 0 : index
    %c8 = arith.constant 8 : index
    %63 = vector.load %arg7[%c0_25, %c8] : memref<16x32xf32, #tpu.memory_space<vmem>>, vector<16x8xf32>
    tpu.vector_store %arg7[%c0_25, %c8], %62 {strides = array<i32>} : memref<16x32xf32, #tpu.memory_space<vmem>>, vector<16x8xf32>,
    %64 = vector.extract_strided_slice %11 {offsets = [0, 2], sizes = [16, 1], strides = [1, 1]} : vector<16x4xf32> to vector<16x1xf32>
    %65 = vector.extract_strided_slice %13 {offsets = [2, 0], sizes = [1, 16], strides = [1, 1]} : vector<4x16xf32> to vector<1x16xf32>
    %66 = vector.broadcast %64 : vector<16x1xf32> to vector<16x16xf32>
    %67 = vector.broadcast %65 : vector<1x16xf32> to vector<16x16xf32>
    %68 = arith.addf %66, %67 : vector<16x16xf32>
    %cst_26 = arith.constant 2.000000e-01 : f32
    %69 = vector.broadcast %cst_26 : f32 to vector<16x16xf32>
    %70 = arith.mulf %69, %68 : vector<16x16xf32>
    %71 = arith.maximumf %68, %70 : vector<16x16xf32>
    %cst_27 = arith.constant 0.000000e+00 : f32
    %72 = vector.broadcast %cst_27 : f32 to vector<16x16xf32>
    %73 = arith.cmpf ogt, %1, %72 : vector<16x16xf32>
    %cst_28 = arith.constant -1.000000e+30 : f32
    %74 = vector.broadcast %cst_28 : f32 to vector<16x16xf32>
    %75 = arith.select %73, %71, %74 : vector<16x16xi1>, vector<16x16xf32>
    %cst_29 = arith.constant dense<0xFF800000> : vector<16xf32>
    %76 = vector.multi_reduction <maximumf>, %75, %cst_29 [1] : vector<16x16xf32> to vector<16xf32>
    %77 = vector.shape_cast %76 : vector<16xf32> to vector<16x1xf32>
    %78 = vector.broadcast %77 : vector<16x1xf32> to vector<16x16xf32>
    %79 = arith.subf %75, %78 : vector<16x16xf32>
    %80 = math.exp %79 : vector<16x16xf32>
    %cst_30 = arith.constant dense<0.000000e+00> : vector<16xf32>
    %81 = vector.multi_reduction <add>, %80, %cst_30 [1] : vector<16x16xf32> to vector<16xf32>
    %82 = vector.shape_cast %81 : vector<16xf32> to vector<16x1xf32>
    %83 = tpu.reciprocal %82 {approx = true} : vector<16x1xf32> -> vector<16x1xf32>
    %84 = vector.broadcast %83 : vector<16x1xf32> to vector<16x16xf32>
    %85 = arith.mulf %80, %84 : vector<16x16xf32>
    %86 = vector.extract_strided_slice %10 {offsets = [0, 16], sizes = [16, 8], strides = [1, 1]} : vector<16x32xf32> to vector<16x8xf32>
    %cst_31 = arith.constant dense<0.000000e+00> : vector<16x8xf32>
    %87 = tpu.matmul %85, %86, %cst_31 {dimension_numbers = #tpu.dot_dimension_numbers<[1], [0], [0], [1], [0, 0, 1, 1], [], []>} : vector<16x16xf32>, vector<16x8xf32>, vector<16x8xf32> -> vector<16x8xf32>
    %c0_32 = arith.constant 0 : index
    %c16 = arith.constant 16 : index
    %88 = vector.load %arg7[%c0_32, %c16] : memref<16x32xf32, #tpu.memory_space<vmem>>, vector<16x8xf32>
    tpu.vector_store %arg7[%c0_32, %c16], %87 {strides = array<i32>} : memref<16x32xf32, #tpu.memory_space<vmem>>, vector<16x8xf32>,
    %89 = vector.extract_strided_slice %11 {offsets = [0, 3], sizes = [16, 1], strides = [1, 1]} : vector<16x4xf32> to vector<16x1xf32>
    %90 = vector.extract_strided_slice %13 {offsets = [3, 0], sizes = [1, 16], strides = [1, 1]} : vector<4x16xf32> to vector<1x16xf32>
    %91 = vector.broadcast %89 : vector<16x1xf32> to vector<16x16xf32>
    %92 = vector.broadcast %90 : vector<1x16xf32> to vector<16x16xf32>
    %93 = arith.addf %91, %92 : vector<16x16xf32>
    %cst_33 = arith.constant 2.000000e-01 : f32
    %94 = vector.broadcast %cst_33 : f32 to vector<16x16xf32>
    %95 = arith.mulf %94, %93 : vector<16x16xf32>
    %96 = arith.maximumf %93, %95 : vector<16x16xf32>
    %cst_34 = arith.constant 0.000000e+00 : f32
    %97 = vector.broadcast %cst_34 : f32 to vector<16x16xf32>
    %98 = arith.cmpf ogt, %1, %97 : vector<16x16xf32>
    %cst_35 = arith.constant -1.000000e+30 : f32
    %99 = vector.broadcast %cst_35 : f32 to vector<16x16xf32>
    %100 = arith.select %98, %96, %99 : vector<16x16xi1>, vector<16x16xf32>
    %cst_36 = arith.constant dense<0xFF800000> : vector<16xf32>
    %101 = vector.multi_reduction <maximumf>, %100, %cst_36 [1] : vector<16x16xf32> to vector<16xf32>
    %102 = vector.shape_cast %101 : vector<16xf32> to vector<16x1xf32>
    %103 = vector.broadcast %102 : vector<16x1xf32> to vector<16x16xf32>
    %104 = arith.subf %100, %103 : vector<16x16xf32>
    %105 = math.exp %104 : vector<16x16xf32>
    %cst_37 = arith.constant dense<0.000000e+00> : vector<16xf32>
    %106 = vector.multi_reduction <add>, %105, %cst_37 [1] : vector<16x16xf32> to vector<16xf32>
    %107 = vector.shape_cast %106 : vector<16xf32> to vector<16x1xf32>
    %108 = tpu.reciprocal %107 {approx = true} : vector<16x1xf32> -> vector<16x1xf32>
    %109 = vector.broadcast %108 : vector<16x1xf32> to vector<16x16xf32>
    %110 = arith.mulf %105, %109 : vector<16x16xf32>
    %111 = vector.extract_strided_slice %10 {offsets = [0, 24], sizes = [16, 8], strides = [1, 1]} : vector<16x32xf32> to vector<16x8xf32>
    %cst_38 = arith.constant dense<0.000000e+00> : vector<16x8xf32>
    %112 = tpu.matmul %110, %111, %cst_38 {dimension_numbers = #tpu.dot_dimension_numbers<[1], [0], [0], [1], [0, 0, 1, 1], [], []>} : vector<16x16xf32>, vector<16x8xf32>, vector<16x8xf32> -> vector<16x8xf32>
    %c0_39 = arith.constant 0 : index
    %c24 = arith.constant 24 : index
    %113 = vector.load %arg7[%c0_39, %c24] : memref<16x32xf32, #tpu.memory_space<vmem>>, vector<16x8xf32>
    tpu.vector_store %arg7[%c0_39, %c24], %112 {strides = array<i32>} : memref<16x32xf32, #tpu.memory_space<vmem>>, vector<16x8xf32>,
    %c0_40 = arith.constant 0 : index
    %c0_41 = arith.constant 0 : index
    %114 = vector.load %arg7[%c0_40, %c0_41] : memref<16x32xf32, #tpu.memory_space<vmem>>, vector<16x32xf32>
    %cst_42 = arith.constant 0.000000e+00 : f32
    %115 = vector.shape_cast %5 : vector<16x1xi1> to vector<16x1xi1>
    %116 = vector.broadcast %115 : vector<16x1xi1> to vector<16x32xi1>
    %117 = vector.broadcast %cst_42 : f32 to vector<16x32xf32>
    %118 = arith.select %116, %114, %117 : vector<16x32xi1>, vector<16x32xf32>
    %c0_43 = arith.constant 0 : index
    %c0_44 = arith.constant 0 : index
    %119 = vector.load %arg5[%c0_43, %c0_44] : memref<1x81xf32, #tpu.memory_space<vmem>>, vector<1x32xf32>
    %120 = vector.broadcast %119 : vector<1x32xf32> to vector<16x32xf32>
    %121 = arith.addf %118, %120 : vector<16x32xf32>
    %cst_45 = arith.constant 0.000000e+00 : f32
    %122 = vector.broadcast %cst_45 : f32 to vector<16x32xf32>
    %123 = arith.maximumf %121, %122 : vector<16x32xf32>
    %c0_46 = arith.constant 0 : index
    %c40 = arith.constant 40 : index
    %124 = vector.load %arg4[%c0_46, %c40] : memref<32x99xf32, #tpu.memory_space<vmem>>, vector<32x40xf32>
    %cst_47 = arith.constant dense<0.000000e+00> : vector<16x40xf32>
    %125 = tpu.matmul %123, %124, %cst_47 {dimension_numbers = #tpu.dot_dimension_numbers<[1], [0], [0], [1], [0, 0, 1, 1], [], []>} : vector<16x32xf32>, vector<32x40xf32>, vector<16x40xf32> -> vector<16x40xf32>
    %126 = vector.extract_strided_slice %125 {offsets = [0, 0], sizes = [16, 32], strides = [1, 1]} : vector<16x40xf32> to vector<16x32xf32>
    %127 = vector.extract_strided_slice %125 {offsets = [0, 32], sizes = [16, 4], strides = [1, 1]} : vector<16x40xf32> to vector<16x4xf32>
    %128 = vector.extract_strided_slice %125 {offsets = [0, 36], sizes = [16, 4], strides = [1, 1]} : vector<16x40xf32> to vector<16x4xf32>
    %129 = tpu.transpose %128, [1, 0] : vector<16x4xf32> -> vector<4x16xf32>
    %130 = vector.extract_strided_slice %127 {offsets = [0, 0], sizes = [16, 1], strides = [1, 1]} : vector<16x4xf32> to vector<16x1xf32>
    %131 = vector.extract_strided_slice %129 {offsets = [0, 0], sizes = [1, 16], strides = [1, 1]} : vector<4x16xf32> to vector<1x16xf32>
    %132 = vector.broadcast %130 : vector<16x1xf32> to vector<16x16xf32>
    %133 = vector.broadcast %131 : vector<1x16xf32> to vector<16x16xf32>
    %134 = arith.addf %132, %133 : vector<16x16xf32>
    %cst_48 = arith.constant 2.000000e-01 : f32
    %135 = vector.broadcast %cst_48 : f32 to vector<16x16xf32>
    %136 = arith.mulf %135, %134 : vector<16x16xf32>
    %137 = arith.maximumf %134, %136 : vector<16x16xf32>
    %cst_49 = arith.constant 0.000000e+00 : f32
    %138 = vector.broadcast %cst_49 : f32 to vector<16x16xf32>
    %139 = arith.cmpf ogt, %1, %138 : vector<16x16xf32>
    %cst_50 = arith.constant -1.000000e+30 : f32
    %140 = vector.broadcast %cst_50 : f32 to vector<16x16xf32>
    %141 = arith.select %139, %137, %140 : vector<16x16xi1>, vector<16x16xf32>
    %cst_51 = arith.constant dense<0xFF800000> : vector<16xf32>
    %142 = vector.multi_reduction <maximumf>, %141, %cst_51 [1] : vector<16x16xf32> to vector<16xf32>
    %143 = vector.shape_cast %142 : vector<16xf32> to vector<16x1xf32>
    %144 = vector.broadcast %143 : vector<16x1xf32> to vector<16x16xf32>
    %145 = arith.subf %141, %144 : vector<16x16xf32>
    %146 = math.exp %145 : vector<16x16xf32>
    %cst_52 = arith.constant dense<0.000000e+00> : vector<16xf32>
    %147 = vector.multi_reduction <add>, %146, %cst_52 [1] : vector<16x16xf32> to vector<16xf32>
    %148 = vector.shape_cast %147 : vector<16xf32> to vector<16x1xf32>
    %149 = tpu.reciprocal %148 {approx = true} : vector<16x1xf32> -> vector<16x1xf32>
    %150 = vector.broadcast %149 : vector<16x1xf32> to vector<16x16xf32>
    %151 = arith.mulf %146, %150 : vector<16x16xf32>
    %152 = vector.extract_strided_slice %126 {offsets = [0, 0], sizes = [16, 8], strides = [1, 1]} : vector<16x32xf32> to vector<16x8xf32>
    %cst_53 = arith.constant dense<0.000000e+00> : vector<16x8xf32>
    %153 = tpu.matmul %151, %152, %cst_53 {dimension_numbers = #tpu.dot_dimension_numbers<[1], [0], [0], [1], [0, 0, 1, 1], [], []>} : vector<16x16xf32>, vector<16x8xf32>, vector<16x8xf32> -> vector<16x8xf32>
    %c0_54 = arith.constant 0 : index
    %c0_55 = arith.constant 0 : index
    %154 = vector.load %arg7[%c0_54, %c0_55] : memref<16x32xf32, #tpu.memory_space<vmem>>, vector<16x8xf32>
    tpu.vector_store %arg7[%c0_54, %c0_55], %153 {strides = array<i32>} : memref<16x32xf32, #tpu.memory_space<vmem>>, vector<16x8xf32>,
    %155 = vector.extract_strided_slice %127 {offsets = [0, 1], sizes = [16, 1], strides = [1, 1]} : vector<16x4xf32> to vector<16x1xf32>
    %156 = vector.extract_strided_slice %129 {offsets = [1, 0], sizes = [1, 16], strides = [1, 1]} : vector<4x16xf32> to vector<1x16xf32>
    %157 = vector.broadcast %155 : vector<16x1xf32> to vector<16x16xf32>
    %158 = vector.broadcast %156 : vector<1x16xf32> to vector<16x16xf32>
    %159 = arith.addf %157, %158 : vector<16x16xf32>
    %cst_56 = arith.constant 2.000000e-01 : f32
    %160 = vector.broadcast %cst_56 : f32 to vector<16x16xf32>
    %161 = arith.mulf %160, %159 : vector<16x16xf32>
    %162 = arith.maximumf %159, %161 : vector<16x16xf32>
    %cst_57 = arith.constant 0.000000e+00 : f32
    %163 = vector.broadcast %cst_57 : f32 to vector<16x16xf32>
    %164 = arith.cmpf ogt, %1, %163 : vector<16x16xf32>
    %cst_58 = arith.constant -1.000000e+30 : f32
    %165 = vector.broadcast %cst_58 : f32 to vector<16x16xf32>
    %166 = arith.select %164, %162, %165 : vector<16x16xi1>, vector<16x16xf32>
    %cst_59 = arith.constant dense<0xFF800000> : vector<16xf32>
    %167 = vector.multi_reduction <maximumf>, %166, %cst_59 [1] : vector<16x16xf32> to vector<16xf32>
    %168 = vector.shape_cast %167 : vector<16xf32> to vector<16x1xf32>
    %169 = vector.broadcast %168 : vector<16x1xf32> to vector<16x16xf32>
    %170 = arith.subf %166, %169 : vector<16x16xf32>
    %171 = math.exp %170 : vector<16x16xf32>
    %cst_60 = arith.constant dense<0.000000e+00> : vector<16xf32>
    %172 = vector.multi_reduction <add>, %171, %cst_60 [1] : vector<16x16xf32> to vector<16xf32>
    %173 = vector.shape_cast %172 : vector<16xf32> to vector<16x1xf32>
    %174 = tpu.reciprocal %173 {approx = true} : vector<16x1xf32> -> vector<16x1xf32>
    %175 = vector.broadcast %174 : vector<16x1xf32> to vector<16x16xf32>
    %176 = arith.mulf %171, %175 : vector<16x16xf32>
    %177 = vector.extract_strided_slice %126 {offsets = [0, 8], sizes = [16, 8], strides = [1, 1]} : vector<16x32xf32> to vector<16x8xf32>
    %cst_61 = arith.constant dense<0.000000e+00> : vector<16x8xf32>
    %178 = tpu.matmul %176, %177, %cst_61 {dimension_numbers = #tpu.dot_dimension_numbers<[1], [0], [0], [1], [0, 0, 1, 1], [], []>} : vector<16x16xf32>, vector<16x8xf32>, vector<16x8xf32> -> vector<16x8xf32>
    %c0_62 = arith.constant 0 : index
    %c8_63 = arith.constant 8 : index
    %179 = vector.load %arg7[%c0_62, %c8_63] : memref<16x32xf32, #tpu.memory_space<vmem>>, vector<16x8xf32>
    tpu.vector_store %arg7[%c0_62, %c8_63], %178 {strides = array<i32>} : memref<16x32xf32, #tpu.memory_space<vmem>>, vector<16x8xf32>,
    %180 = vector.extract_strided_slice %127 {offsets = [0, 2], sizes = [16, 1], strides = [1, 1]} : vector<16x4xf32> to vector<16x1xf32>
    %181 = vector.extract_strided_slice %129 {offsets = [2, 0], sizes = [1, 16], strides = [1, 1]} : vector<4x16xf32> to vector<1x16xf32>
    %182 = vector.broadcast %180 : vector<16x1xf32> to vector<16x16xf32>
    %183 = vector.broadcast %181 : vector<1x16xf32> to vector<16x16xf32>
    %184 = arith.addf %182, %183 : vector<16x16xf32>
    %cst_64 = arith.constant 2.000000e-01 : f32
    %185 = vector.broadcast %cst_64 : f32 to vector<16x16xf32>
    %186 = arith.mulf %185, %184 : vector<16x16xf32>
    %187 = arith.maximumf %184, %186 : vector<16x16xf32>
    %cst_65 = arith.constant 0.000000e+00 : f32
    %188 = vector.broadcast %cst_65 : f32 to vector<16x16xf32>
    %189 = arith.cmpf ogt, %1, %188 : vector<16x16xf32>
    %cst_66 = arith.constant -1.000000e+30 : f32
    %190 = vector.broadcast %cst_66 : f32 to vector<16x16xf32>
    %191 = arith.select %189, %187, %190 : vector<16x16xi1>, vector<16x16xf32>
    %cst_67 = arith.constant dense<0xFF800000> : vector<16xf32>
    %192 = vector.multi_reduction <maximumf>, %191, %cst_67 [1] : vector<16x16xf32> to vector<16xf32>
    %193 = vector.shape_cast %192 : vector<16xf32> to vector<16x1xf32>
    %194 = vector.broadcast %193 : vector<16x1xf32> to vector<16x16xf32>
    %195 = arith.subf %191, %194 : vector<16x16xf32>
    %196 = math.exp %195 : vector<16x16xf32>
    %cst_68 = arith.constant dense<0.000000e+00> : vector<16xf32>
    %197 = vector.multi_reduction <add>, %196, %cst_68 [1] : vector<16x16xf32> to vector<16xf32>
    %198 = vector.shape_cast %197 : vector<16xf32> to vector<16x1xf32>
    %199 = tpu.reciprocal %198 {approx = true} : vector<16x1xf32> -> vector<16x1xf32>
    %200 = vector.broadcast %199 : vector<16x1xf32> to vector<16x16xf32>
    %201 = arith.mulf %196, %200 : vector<16x16xf32>
    %202 = vector.extract_strided_slice %126 {offsets = [0, 16], sizes = [16, 8], strides = [1, 1]} : vector<16x32xf32> to vector<16x8xf32>
    %cst_69 = arith.constant dense<0.000000e+00> : vector<16x8xf32>
    %203 = tpu.matmul %201, %202, %cst_69 {dimension_numbers = #tpu.dot_dimension_numbers<[1], [0], [0], [1], [0, 0, 1, 1], [], []>} : vector<16x16xf32>, vector<16x8xf32>, vector<16x8xf32> -> vector<16x8xf32>
    %c0_70 = arith.constant 0 : index
    %c16_71 = arith.constant 16 : index
    %204 = vector.load %arg7[%c0_70, %c16_71] : memref<16x32xf32, #tpu.memory_space<vmem>>, vector<16x8xf32>
    tpu.vector_store %arg7[%c0_70, %c16_71], %203 {strides = array<i32>} : memref<16x32xf32, #tpu.memory_space<vmem>>, vector<16x8xf32>,
    %205 = vector.extract_strided_slice %127 {offsets = [0, 3], sizes = [16, 1], strides = [1, 1]} : vector<16x4xf32> to vector<16x1xf32>
    %206 = vector.extract_strided_slice %129 {offsets = [3, 0], sizes = [1, 16], strides = [1, 1]} : vector<4x16xf32> to vector<1x16xf32>
    %207 = vector.broadcast %205 : vector<16x1xf32> to vector<16x16xf32>
    %208 = vector.broadcast %206 : vector<1x16xf32> to vector<16x16xf32>
    %209 = arith.addf %207, %208 : vector<16x16xf32>
    %cst_72 = arith.constant 2.000000e-01 : f32
    %210 = vector.broadcast %cst_72 : f32 to vector<16x16xf32>
    %211 = arith.mulf %210, %209 : vector<16x16xf32>
    %212 = arith.maximumf %209, %211 : vector<16x16xf32>
    %cst_73 = arith.constant 0.000000e+00 : f32
    %213 = vector.broadcast %cst_73 : f32 to vector<16x16xf32>
    %214 = arith.cmpf ogt, %1, %213 : vector<16x16xf32>
    %cst_74 = arith.constant -1.000000e+30 : f32
    %215 = vector.broadcast %cst_74 : f32 to vector<16x16xf32>
    %216 = arith.select %214, %212, %215 : vector<16x16xi1>, vector<16x16xf32>
    %cst_75 = arith.constant dense<0xFF800000> : vector<16xf32>
    %217 = vector.multi_reduction <maximumf>, %216, %cst_75 [1] : vector<16x16xf32> to vector<16xf32>
    %218 = vector.shape_cast %217 : vector<16xf32> to vector<16x1xf32>
    %219 = vector.broadcast %218 : vector<16x1xf32> to vector<16x16xf32>
    %220 = arith.subf %216, %219 : vector<16x16xf32>
    %221 = math.exp %220 : vector<16x16xf32>
    %cst_76 = arith.constant dense<0.000000e+00> : vector<16xf32>
    %222 = vector.multi_reduction <add>, %221, %cst_76 [1] : vector<16x16xf32> to vector<16xf32>
    %223 = vector.shape_cast %222 : vector<16xf32> to vector<16x1xf32>
    %224 = tpu.reciprocal %223 {approx = true} : vector<16x1xf32> -> vector<16x1xf32>
    %225 = vector.broadcast %224 : vector<16x1xf32> to vector<16x16xf32>
    %226 = arith.mulf %221, %225 : vector<16x16xf32>
    %227 = vector.extract_strided_slice %126 {offsets = [0, 24], sizes = [16, 8], strides = [1, 1]} : vector<16x32xf32> to vector<16x8xf32>
    %cst_77 = arith.constant dense<0.000000e+00> : vector<16x8xf32>
    %228 = tpu.matmul %226, %227, %cst_77 {dimension_numbers = #tpu.dot_dimension_numbers<[1], [0], [0], [1], [0, 0, 1, 1], [], []>} : vector<16x16xf32>, vector<16x8xf32>, vector<16x8xf32> -> vector<16x8xf32>
    %c0_78 = arith.constant 0 : index
    %c24_79 = arith.constant 24 : index
    %229 = vector.load %arg7[%c0_78, %c24_79] : memref<16x32xf32, #tpu.memory_space<vmem>>, vector<16x8xf32>
    tpu.vector_store %arg7[%c0_78, %c24_79], %228 {strides = array<i32>} : memref<16x32xf32, #tpu.memory_space<vmem>>, vector<16x8xf32>,
    %c0_80 = arith.constant 0 : index
    %c0_81 = arith.constant 0 : index
    %230 = vector.load %arg7[%c0_80, %c0_81] : memref<16x32xf32, #tpu.memory_space<vmem>>, vector<16x32xf32>
    %cst_82 = arith.constant 0.000000e+00 : f32
    %231 = vector.shape_cast %5 : vector<16x1xi1> to vector<16x1xi1>
    %232 = vector.broadcast %231 : vector<16x1xi1> to vector<16x32xi1>
    %233 = vector.broadcast %cst_82 : f32 to vector<16x32xf32>
    %234 = arith.select %232, %230, %233 : vector<16x32xi1>, vector<16x32xf32>
    %c0_83 = arith.constant 0 : index
    %c32 = arith.constant 32 : index
    %235 = vector.load %arg5[%c0_83, %c32] : memref<1x81xf32, #tpu.memory_space<vmem>>, vector<1x32xf32>
    %236 = vector.broadcast %235 : vector<1x32xf32> to vector<16x32xf32>
    %237 = arith.addf %234, %236 : vector<16x32xf32>
    %cst_84 = arith.constant 0.000000e+00 : f32
    %238 = vector.broadcast %cst_84 : f32 to vector<16x32xf32>
    %239 = arith.maximumf %237, %238 : vector<16x32xf32>
    %c0_85 = arith.constant 0 : index
    %c80 = arith.constant 80 : index
    %240 = vector.load %arg4[%c0_85, %c80] : memref<32x99xf32, #tpu.memory_space<vmem>>, vector<32x18xf32>
    %cst_86 = arith.constant dense<0.000000e+00> : vector<16x18xf32>
    %241 = tpu.matmul %239, %240, %cst_86 {dimension_numbers = #tpu.dot_dimension_numbers<[1], [0], [0], [1], [0, 0, 1, 1], [], []>} : vector<16x32xf32>, vector<32x18xf32>, vector<16x18xf32> -> vector<16x18xf32>
    %242 = vector.extract_strided_slice %241 {offsets = [0, 0], sizes = [16, 16], strides = [1, 1]} : vector<16x18xf32> to vector<16x16xf32>
    %243 = vector.extract_strided_slice %241 {offsets = [0, 16], sizes = [16, 1], strides = [1, 1]} : vector<16x18xf32> to vector<16x1xf32>
    %244 = vector.extract_strided_slice %241 {offsets = [0, 17], sizes = [16, 1], strides = [1, 1]} : vector<16x18xf32> to vector<16x1xf32>
    %245 = tpu.transpose %244, [1, 0] : vector<16x1xf32> -> vector<1x16xf32>
    %246 = vector.broadcast %243 : vector<16x1xf32> to vector<16x16xf32>
    %247 = vector.broadcast %245 : vector<1x16xf32> to vector<16x16xf32>
    %248 = arith.addf %246, %247 : vector<16x16xf32>
    %cst_87 = arith.constant 2.000000e-01 : f32
    %249 = vector.broadcast %cst_87 : f32 to vector<16x16xf32>
    %250 = arith.mulf %249, %248 : vector<16x16xf32>
    %251 = arith.maximumf %248, %250 : vector<16x16xf32>
    %cst_88 = arith.constant 0.000000e+00 : f32
    %252 = vector.broadcast %cst_88 : f32 to vector<16x16xf32>
    %253 = arith.cmpf ogt, %1, %252 : vector<16x16xf32>
    %cst_89 = arith.constant -1.000000e+30 : f32
    %254 = vector.broadcast %cst_89 : f32 to vector<16x16xf32>
    %255 = arith.select %253, %251, %254 : vector<16x16xi1>, vector<16x16xf32>
    %cst_90 = arith.constant dense<0xFF800000> : vector<16xf32>
    %256 = vector.multi_reduction <maximumf>, %255, %cst_90 [1] : vector<16x16xf32> to vector<16xf32>
    %257 = vector.shape_cast %256 : vector<16xf32> to vector<16x1xf32>
    %258 = vector.broadcast %257 : vector<16x1xf32> to vector<16x16xf32>
    %259 = arith.subf %255, %258 : vector<16x16xf32>
    %260 = math.exp %259 : vector<16x16xf32>
    %cst_91 = arith.constant dense<0.000000e+00> : vector<16xf32>
    %261 = vector.multi_reduction <add>, %260, %cst_91 [1] : vector<16x16xf32> to vector<16xf32>
    %262 = vector.shape_cast %261 : vector<16xf32> to vector<16x1xf32>
    %263 = tpu.reciprocal %262 {approx = true} : vector<16x1xf32> -> vector<16x1xf32>
    %264 = vector.broadcast %263 : vector<16x1xf32> to vector<16x16xf32>
    %265 = arith.mulf %260, %264 : vector<16x16xf32>
    %cst_92 = arith.constant dense<0.000000e+00> : vector<16x16xf32>
    %266 = tpu.matmul %265, %242, %cst_92 {dimension_numbers = #tpu.dot_dimension_numbers<[1], [0], [0], [1], [0, 0, 1, 1], [], []>} : vector<16x16xf32>, vector<16x16xf32>, vector<16x16xf32> -> vector<16x16xf32>
    %c0_93 = arith.constant 0 : index
    %c0_94 = arith.constant 0 : index
    %267 = vector.load %arg7[%c0_93, %c0_94] : memref<16x32xf32, #tpu.memory_space<vmem>>, vector<16x16xf32>
    tpu.vector_store %arg7[%c0_93, %c0_94], %266 {strides = array<i32>} : memref<16x32xf32, #tpu.memory_space<vmem>>, vector<16x16xf32>,
    %c0_95 = arith.constant 0 : index
    %c0_96 = arith.constant 0 : index
    %268 = vector.load %arg7[%c0_95, %c0_96] : memref<16x32xf32, #tpu.memory_space<vmem>>, vector<16x16xf32>
    %cst_97 = arith.constant 0.000000e+00 : f32
    %269 = vector.shape_cast %5 : vector<16x1xi1> to vector<16x1xi1>
    %270 = vector.broadcast %269 : vector<16x1xi1> to vector<16x16xi1>
    %271 = vector.broadcast %cst_97 : f32 to vector<16x16xf32>
    %272 = arith.select %270, %268, %271 : vector<16x16xi1>, vector<16x16xf32>
    %c0_98 = arith.constant 0 : index
    %c64 = arith.constant 64 : index
    %273 = vector.load %arg5[%c0_98, %c64] : memref<1x81xf32, #tpu.memory_space<vmem>>, vector<1x16xf32>
    %274 = vector.broadcast %273 : vector<1x16xf32> to vector<16x16xf32>
    %275 = arith.addf %272, %274 : vector<16x16xf32>
    %cst_99 = arith.constant 0.000000e+00 : f32
    %276 = vector.broadcast %cst_99 : f32 to vector<16x16xf32>
    %277 = arith.maximumf %275, %276 : vector<16x16xf32>
    %c0_100 = arith.constant 0 : index
    %c98 = arith.constant 98 : index
    %278 = vector.load %arg4[%c0_100, %c98] : memref<32x99xf32, #tpu.memory_space<vmem>>, vector<16x1xf32>
    %cst_101 = arith.constant dense<0.000000e+00> : vector<16x1xf32>
    %279 = tpu.matmul %277, %278, %cst_101 {dimension_numbers = #tpu.dot_dimension_numbers<[1], [0], [0], [1], [0, 0, 1, 1], [], []>} : vector<16x16xf32>, vector<16x1xf32>, vector<16x1xf32> -> vector<16x1xf32>
    %c0_102 = arith.constant 0 : index
    %c80_103 = arith.constant 80 : index
    %280 = vector.load %arg5[%c0_102, %c80_103] : memref<1x81xf32, #tpu.memory_space<vmem>>, vector<1x1xf32>
    %281 = vector.broadcast %280 : vector<1x1xf32> to vector<16x1xf32>
    %282 = arith.addf %279, %281 : vector<16x1xf32>
    %283 = arith.negf %282 : vector<16x1xf32>
    %284 = math.exp %283 : vector<16x1xf32>
    %cst_104 = arith.constant 1.000000e+00 : f32
    %285 = vector.broadcast %cst_104 : f32 to vector<16x1xf32>
    %286 = arith.addf %285, %284 : vector<16x1xf32>
    %287 = arith.divf %285, %286 : vector<16x1xf32>
    %cst_105 = arith.constant dense<0xFF800000> : vector<1xf32>
    %288 = vector.multi_reduction <maximumf>, %287, %cst_105 [0] : vector<16x1xf32> to vector<1xf32>
    %289 = vector.shape_cast %288 : vector<1xf32> to vector<1x1xf32>
    %290 = vector.broadcast %289 : vector<1x1xf32> to vector<16x1xf32>
    %291 = arith.subf %287, %290 : vector<16x1xf32>
    %292 = math.exp %291 : vector<16x1xf32>
    %cst_106 = arith.constant dense<0.000000e+00> : vector<1xf32>
    %293 = vector.multi_reduction <add>, %292, %cst_106 [0] : vector<16x1xf32> to vector<1xf32>
    %294 = vector.shape_cast %293 : vector<1xf32> to vector<1x1xf32>
    %295 = tpu.reciprocal %294 {approx = true} : vector<1x1xf32> -> vector<1x1xf32>
    %296 = vector.broadcast %295 : vector<1x1xf32> to vector<16x1xf32>
    %297 = arith.mulf %292, %296 : vector<16x1xf32>
    %298 = vector.broadcast %297 : vector<16x1xf32> to vector<16x16xf32>
    %299 = arith.mulf %298, %277 : vector<16x16xf32>
    %cst_107 = arith.constant dense<0.000000e+00> : vector<16xf32>
    %300 = vector.multi_reduction <add>, %299, %cst_107 [0] : vector<16x16xf32> to vector<16xf32>
    %301 = vector.shape_cast %300 : vector<16xf32> to vector<1x16xf32>
    %c0_108 = arith.constant 0 : index
    %c0_109 = arith.constant 0 : index
    %c0_110 = arith.constant 0 : index
    %302 = vector.load %arg6[%c0_108, %c0_109, %c0_110] : memref<1x1x16xf32, #tpu.memory_space<vmem>>, vector<1x1x16xf32>
    %303 = vector.shape_cast %302 : vector<1x1x16xf32> to vector<1x16xf32>
    %304 = vector.shape_cast %301 : vector<1x16xf32> to vector<1x1x16xf32>
    tpu.vector_store %arg6[%c0_108, %c0_109, %c0_110], %304 {strides = array<i32>} : memref<1x1x16xf32, #tpu.memory_space<vmem>>, vector<1x1x16xf32>,
    return
  }
  func.func @transform_0(%arg0: i32) -> (i32, i32, i32) {
    %c0_i32 = arith.constant 0 : i32
    %c0_i32_0 = arith.constant 0 : i32
    %c0_i32_1 = arith.constant 0 : i32
    return %arg0, %c0_i32, %c0_i32_0 : i32, i32, i32
  }
  func.func @transform_1(%arg0: i32) -> (i32, i32, i32) {
    %c0_i32 = arith.constant 0 : i32
    %c0_i32_0 = arith.constant 0 : i32
    %c0_i32_1 = arith.constant 0 : i32
    return %arg0, %c0_i32, %c0_i32_0 : i32, i32, i32
  }
  func.func @transform_2(%arg0: i32) -> (i32, i32, i32) {
    %c0_i32 = arith.constant 0 : i32
    %c0_i32_0 = arith.constant 0 : i32
    %c0_i32_1 = arith.constant 0 : i32
    return %arg0, %c0_i32, %c0_i32_0 : i32, i32, i32
  }
  func.func @transform_3(%arg0: i32) -> (i32, i32) {
    %c0_i32 = arith.constant 0 : i32
    %c0_i32_0 = arith.constant 0 : i32
    %c0_i32_1 = arith.constant 0 : i32
    return %c0_i32, %c0_i32_0 : i32, i32
  }
  func.func @transform_4(%arg0: i32) -> (i32, i32) {
    %c0_i32 = arith.constant 0 : i32
    %c0_i32_0 = arith.constant 0 : i32
    %c0_i32_1 = arith.constant 0 : i32
    return %c0_i32, %c0_i32_0 : i32, i32
  }
  func.func @transform_5(%arg0: i32) -> (i32, i32, i32) {
    %c0_i32 = arith.constant 0 : i32
    %c0_i32_0 = arith.constant 0 : i32
    %c0_i32_1 = arith.constant 0 : i32
    return %arg0, %c0_i32, %c0_i32_0 : i32, i32, i32
  }
}

</mosaic_0001>

<bundles_post_ra>
// kernel: gat_forward_batched.1
= control target key start
LH: loop header
LB: loop body
LE: loop exit
PB: predicated region body
PF: predicated region fallthrough
CT: control target
= control target key end

     0   :  { %s1788_s18 = smov 0   ;;  %s2085_s0 = inlined_call_operand.vmem [shape: f32[3,16,16], index: 0, kind: input, shape index: {}]   ;;  %s2086_s1 = inlined_call_operand.vmem [shape: f32[3,16,16], index: 1, kind: input, shape index: {}]   ;;  %s2087_s2 = inlined_call_operand.vmem [shape: f32[3,16,1], index: 2, kind: input, shape index: {}]   ;;  %s2088_s3 = inlined_call_operand.vmem [shape: f32[32,99], index: 3, kind: input, shape index: {}]   ;;  %s2089_s4 = inlined_call_operand.vmem [shape: f32[1,81], index: 4, kind: input, shape index: {}]   ;;  %s2090_s5 = inlined_call_operand.vmem [shape: f32[3,1,16], index: 5, kind: output, shape index: {}]  }
   0x1 LB: > { %s1492_s19 = sadd.s32 4294967295, %s1737_s18   ;;  %p1496_p0 = scmp.ge.s32.totalorder %s1737_s18, 1  ;;  %s1737_s18 = sphi %s1788_s18, %s15_s18  }
   0x2   : > { %p207_p1 = scmp.lt.s32.totalorder %s1737_s18, 4 }
   0x4   : > { %p208_p2 = pnand %p1496_p0, %p207_p1 }
   0x5   : > { %p243_p3 = scmp.lt.s32.totalorder (!%p208_p2), %s1492_s19, 2  ;;  %s1741_s28 = smov (!%p208_p2), 92  }
   0x6   : > { %211 = sbr.rel (%p208_p2) target bundleno = 3117 (0xc2d), region = 40  ;;  %s1744_s29 = smov (!%p208_p2), 104  }
   0x7   : > { %s1745_s8 = smov (!%p208_p2), 120   ;;  %s1746_s9 = smov (!%p208_p2), 112  }
   0x8   : > { %s1747_s14 = smov (!%p208_p2), 88   ;;  %s1749_s20 = smov (!%p208_p2), 8  }
   0x9   : > { %s1750_s21 = smov (!%p208_p2), 24   ;;  %s1751_s22 = smov (!%p208_p2), 16  }
   0xa   : > { %s1752_s25 = smov (!%p208_p2), 48   ;;  %s1757_s12 = smov (!%p208_p2), 64  }
   0xb   : > { %v1799_v0 = vld [vmem:[%s2088_s3 + $0x8] sm:$0xff]  ;;  %v1804_v1 = vld [vmem:[%s2088_s3] sm:$0xff]  ;;  %s2092_s19 = smov (!%p243_p3, %s1492_s19), 2  ;;  %v1739_v2 = vmov 33   ;;  %vm271_vm0 = vcmask 130048   ;;  %v1740_v5 = vmov 34  }
   0xc   : > { %292 = vmatpush.msra.mxu0 %v1799_v0  ;;  %1536 = vmatpush.msra.mxu1 %v1799_v0  ;;  %s1815_s24 = sshll.u32 %s2092_s19, 4  ;;  %v1742_v8 = vmov 35   ;;  %v1743_v9 = vmov 32   ;;  %vm411_vm5 = vcmask 64512   ;;  %vm496_vm6 = vcmask 130112   ;;  %s260_s15 = scalar_lea.vmem %s2090_s5, %s2092_s19 }
   0xd   : > { %1568 = vset.pattern.permute.xlu2 %v1739_v2  ;;  %1566 = vset.pattern.permute.xlu1 %v1739_v2  ;;  %s247_s27 = scalar_lea.vmem %s2085_s0, %s1815_s24  ;;  %s252_s7 = scalar_lea.vmem %s2086_s1, %s1815_s24  ;;  %vm581_vm7 = vcmask 195712   ;;  %vm666_vm8 = vcmask 261312   ;;  %vm711_vm10 = vcmask 261120  }
   0xe   : > { %293 = vmatpush.msra.mxu0 %v1804_v1  ;;  %1537 = vmatpush.msra.mxu1 %v1804_v1  ;;  %v267_v3 = vld [vmem:[%s247_s27] sm:$0xff]  ;;  %v268_v4 = vld [vmem:[%s247_s27 + $0x8] sm:$0xff]  ;;  %s257_s17 = scalar_lea.vmem %s2087_s2, %s1815_s24 }
   0xf   : > { %1503 = vmatmul.msk.f32.vlgmr.msra.gmra.mxu0 %vm271_vm0, %v267_v3  ;;  %1504 = vmatmul.msk.f32.vlgmr.msra.gmra.mxu1 %vm271_vm0, %v268_v4  ;;  %v1837_v23 = vld [vmem:[%s252_s7] sm:$0xff]  ;;  %v1840_v35 = vld [vmem:[%s252_s7 + $0x8] sm:$0xff] }
  0x10   : > { %1570 = vset.pattern.permute.xlu0 %v1740_v5  ;;  %vm356_vm1 = vcmp.gt.f32.partialorder %v1837_v23, 0.0  ;;  %vm357_vm2 = vcmp.gt.f32.partialorder %v1840_v35, 0.0 }
  0x8c   : > { %v295_v6 = vpop.f32.mrf.mxu0  ;;  %v298_v7 = vpop.f32.mrf.mxu1 }
  0x8d   : > { %415 = vperm.xlu1 %1566, %v295_v6   ;;  %303 = vrot.lane.b32.xlu0 %v295_v6, %s1741_s28  ;;  %v1584_v12 = vpack.i.bf16 %v295_v6, %v298_v7 }
  0x8e   : > { %419 = vperm.xlu2 %1568, %v298_v7   ;;  %402 = vmatpush.msrb.mxu1 %v298_v7 }
  0x90   : > { %403 = vmatpush.msrb.mxu1 %v295_v6 }
  0x95   : > { %1567 = vset.pattern.permute.xlu1 %v1740_v5  ;;  %305 = vrot.lane.b32.xlu0 %v298_v7, %s1741_s28 }
  0x96   : > { %1569 = vset.pattern.permute.xlu2 %v1742_v8  ;;  %500 = vperm.xlu1 %1567, %v295_v6  }
  0x97   : > { %585 = vperm.xlu2 %1569, %v295_v6  }
  0x9d   : > { %504 = vperm.xlu0 %1570, %v298_v7  }
  0x9e   : > { %1571 = vset.pattern.permute.xlu1 %v1742_v8 }
  0x9f   : > { %1573 = vset.pattern.permute.xlu2 %v1743_v9  ;;  %589 = vperm.xlu1 %1571, %v298_v7  }
  0xa0   : > { %346 = vperm.xlu2 %1573, %v298_v7  }
  0xa7   : > { %1572 = vset.pattern.permute.xlu1 %v1743_v9 }
  0xa8   : > { %342 = vperm.xlu1 %1572, %v295_v6  }
  0xb0   : > { %1604 = vset.pattern.permute.xlu1 %v1739_v2 }
  0xe8   : > { %v420_v13 = vpop.permute.xlu2 %419 }
  0xf1   : > { %v586_v14 = vpop.permute.xlu2 %585 }
  0xfa   : > { %v347_v16 = vpop.permute.xlu2 %346 }
  0xff   : > { %v304_v10 = vpop.permute.xlu0 %303  ;;  %v416_v15 = vpop.permute.xlu1 %415 }
 0x100   : > { %309 = vxpose.xlu2.b32.start [1/2] (short) (narrow) %v304_v10, 8 }
 0x107   : > { %v306_v11 = vpop.permute.xlu0 %305 }
 0x108   : > { %310 = vxpose.xlu2.b32.end [2/2] (short) (narrow) %v306_v11, 8  ;;  %v501_v17 = vpop.permute.xlu1 %500 }
 0x10f   : > { %v505_v39 = vpop.permute.xlu0 %504 }
 0x111   : > { %v590_v36 = vpop.permute.xlu1 %589 }
 0x11a   : > { %v343_v61 = vpop.permute.xlu1 %342 }
 0x171   : > { %1585 = vrot.lane.b32.xlu2 %v1584_v12, %s1744_s29 }
 0x199   : > { %v325_v18 = vpop.trf.xlu2 }
 0x19a   : > { %v349_v19 = vperm.slane %v325_v18, 0  ;;  %v422_v20 = vperm.slane %v325_v18, 1  ;;  %v507_v21 = vperm.slane %v325_v18, 2  ;;  %v592_v22 = vperm.slane %v325_v18, 3 }
 0x19c   : > { %v508_v24 = vadd.f32 %v507_v21, %v501_v17  ;;  %v423_v25 = vadd.f32 %v422_v20, %v416_v15  ;;  %v593_v26 = vadd.f32 %v592_v22, %v586_v14  ;;  %v424_v27 = vadd.f32 %v422_v20, %v420_v13 }
 0x19d   : > { %v351_v28 = vadd.f32 %v349_v19, %v347_v16  ;;  %v594_v42 = vadd.f32 %v592_v22, %v590_v36  ;;  %v509_v45 = vadd.f32 %v507_v21, %v505_v39  ;;  %v350_v62 = vadd.f32 %v349_v19, %v343_v61 }
 0x19e   : > { %v510_v29 = vmul.f32 0.2, %v508_v24  ;;  %v425_v30 = vmul.f32 0.2, %v423_v25  ;;  %v595_v33 = vmul.f32 0.2, %v593_v26 }
 0x19f   : > { %v426_v34 = vmul.f32 0.2, %v424_v27  ;;  %v596_v46 = vmul.f32 0.2, %v594_v42  ;;  %v511_v49 = vmul.f32 0.2, %v509_v45 }
 0x1a0   : > { %v512_v31 = vmax.f32 %v508_v24, %v510_v29  ;;  %v427_v32 = vmax.f32 %v423_v25, %v425_v30  ;;  %v597_v43 = vmax.f32 %v593_v26, %v595_v33  ;;  %v352_v63 = vmul.f32 0.2, %v350_v62 }
 0x1a1   : > { %v428_v44 = vmax.f32 %v424_v27, %v426_v34  ;;  %v598_v52 = vmax.f32 %v594_v42, %v596_v46  ;;  %v513_v53 = vmax.f32 %v509_v45, %v511_v49  ;;  %v353_v4 = vmul.f32 0.2, %v351_v28 }
 0x1a2   : > { %v514_v37 = vsel %vm356_vm1, %v512_v31, -1e+30  ;;  %v429_v38 = vsel %vm356_vm1, %v427_v32, -1e+30  ;;  %v599_v47 = vsel %vm356_vm1, %v597_v43, -1e+30  ;;  %v354_v3 = vmax.f32 %v350_v62, %v352_v63 }
 0x1a3   : > { %v516_v40 = vsel %vm271_vm0, %v514_v37, -inf  ;;  %v431_v41 = vsel %vm271_vm0, %v429_v38, -inf  ;;  %v430_v48 = vsel %vm357_vm2, %v428_v44, -1e+30  ;;  %v601_v50 = vsel %vm271_vm0, %v599_v47, -inf }
 0x1a4   : > { %517 = vmax.xlane.f32.xlu1 %v516_v40  ;;  %432 = vmax.xlane.f32.xlu0 %v431_v41  ;;  %v434_v51 = vsel %vm271_vm0, %v430_v48, -inf  ;;  %v600_v54 = vsel %vm357_vm2, %v598_v52, -1e+30  ;;  %v515_v55 = vsel %vm357_vm2, %v513_v53, -1e+30  ;;  %v355_v7 = vmax.f32 %v351_v28, %v353_v4 }
 0x1a5   : > { %v604_v56 = vsel %vm271_vm0, %v600_v54, -inf  ;;  %v519_v57 = vsel %vm271_vm0, %v515_v55, -inf  ;;  %v358_v6 = vsel %vm356_vm1, %v354_v3, -1e+30 }
 0x1a6   : > { %v360_v10 = vsel %vm271_vm0, %v358_v6, -inf  ;;  %v359_v11 = vsel %vm357_vm2, %v355_v7, -1e+30 }
 0x1ac   : > { %602 = vmax.xlane.f32.xlu1 %v601_v50  ;;  %435 = vmax.xlane.f32.xlu0 %v434_v51 }
 0x1b4   : > { %605 = vmax.xlane.f32.xlu1 %v604_v56  ;;  %520 = vmax.xlane.f32.xlu0 %v519_v57 }
 0x1c8   : > { %1575 = vrot.lane.b32.xlu0 %v1584_v12, %s1745_s8 }
 0x1cb   : > { %v1586_v58 = vpop.permute.xlu2 %1585 }
 0x1cc   : > { %v1587_v59 = vunpack.i.l.bf16 %v1586_v58  ;;  %v1588_v60 = vunpack.i.h.bf16 %v1586_v58 }
 0x1cd   : > { %1580 = vrot.lane.b32.xlu1 %v1584_v12, %s1746_s9  ;;  %v363_v12 = vsel %vm271_vm0, %v359_v11, -inf }
 0x1ce   : > { %649 = vmatpush.msrb.mxu0 %v1587_v59 }
 0x1d0   : > { %650 = vmatpush.msrb.mxu0 %v1588_v60 }
 0x1f2   : > { %361 = vmax.xlane.f32.xlu0 %v360_v10 }
 0x1f7   : > { %364 = vmax.xlane.f32.xlu1 %v363_v12 }
 0x217   : > { %v518_v13 = vpop.xlane.xlu1 %517  ;;  %v433_v14 = vpop.xlane.xlu0 %432 }
 0x218   : > { %v522_v15 = vsub.f32 %v514_v37, %v518_v13  ;;  %v437_v16 = vsub.f32 %v429_v38, %v433_v14 }
 0x21a   : > { %v524_v17 = vmul.f32 1.442695, %v522_v15  ;;  %v439_v18 = vmul.f32 1.442695, %v437_v16 }
 0x21c   : > { %1645 = vpow2.f32 %v524_v17 }
 0x21d   : > { %1647 = vpow2.f32 %v439_v18 }
 0x21f   : > { %v603_v19 = vpop.xlane.xlu1 %602  ;;  %v436_v20 = vpop.xlane.xlu0 %435 }
 0x220   : > { %v607_v21 = vsub.f32 %v599_v47, %v603_v19  ;;  %v438_v22 = vsub.f32 %v430_v48, %v436_v20 }
 0x222   : > { %v1646_v24 = vpop.eup %1645  ;;  %v609_v25 = vmul.f32 1.442695, %v607_v21  ;;  %v441_v26 = vmul.f32 1.442695, %v438_v22  ;;  %v693_v21 = vld [vmem:[%s2088_s3 + $0x10] sm:$0xff]  ;;  %v694_v22 = vld [vmem:[%s2088_s3 + $0x18] sm:$0xff] }
 0x223   : > { %v1648_v27 = vpop.eup %1647  ;;  %v528_v28 = vsel %vm271_vm0, %v1646_v24, 0.0 }
 0x224   : > { %1649 = vpow2.f32 %v609_v25  ;;  %529 = vadd.xlane.f32.xlu1 %v528_v28  ;;  %v443_v29 = vsel %vm271_vm0, %v1648_v27, 0.0 }
 0x225   : > { %1651 = vpow2.f32 %v441_v26  ;;  %444 = vadd.xlane.f32.xlu0 %v443_v29 }
 0x227   : > { %v606_v30 = vpop.xlane.xlu1 %605  ;;  %v521_v31 = vpop.xlane.xlu0 %520 }
 0x228   : > { %v608_v32 = vsub.f32 %v600_v54, %v606_v30  ;;  %v523_v33 = vsub.f32 %v515_v55, %v521_v31  ;;  %v1748_v31 = vmov 0  }
 0x229   : > { %1600 = vset.pattern.permute.xlu0 %v1748_v31  ;;  %1594 = vset.pattern.permute.xlu2 %v1748_v31 }
 0x22a   : > { %v1650_v34 = vpop.eup %1649  ;;  %v611_v36 = vmul.f32 1.442695, %v608_v32  ;;  %v526_v37 = vmul.f32 1.442695, %v523_v33  ;;  %v263_v32 = vld [vmem:[%s257_s17] sm:$0xff] }
 0x22b   : > { %v1652_v38 = vpop.eup %1651  ;;  %v613_v39 = vsel %vm271_vm0, %v1650_v34, 0.0  ;;  %vm265_vm3 = vcmp.gt.f32.partialorder %v263_v32, 0.0 }
 0x22c   : > { %1653 = vpow2.f32 %v611_v36  ;;  %v446_v40 = vsel %vm271_vm0, %v1652_v38, 0.0  ;;  %v671_v33 = vsel %vm265_vm3, 1, %v1748_v31 }
 0x22d   : > { %1655 = vpow2.f32 %v526_v37  ;;  %614 = vadd.xlane.f32.xlu0 %v613_v39  ;;  %447 = vadd.xlane.f32.xlu1 %v446_v40 }
 0x232   : > { %v1654_v41 = vpop.eup %1653 }
 0x233   : > { %v1656_v42 = vpop.eup %1655  ;;  %v616_v43 = vsel %vm271_vm0, %v1654_v41, 0.0 }
 0x234   : > { %v531_v44 = vsel %vm271_vm0, %v1656_v42, 0.0 }
 0x235   : > { %617 = vadd.xlane.f32.xlu0 %v616_v43  ;;  %532 = vadd.xlane.f32.xlu1 %v531_v44 }
 0x23a   : > { %v1576_v45 = vpop.permute.xlu0 %1575 }
 0x23b   : > { %v1577_v46 = vunpack.i.l.bf16 %v1576_v45  ;;  %v1578_v47 = vunpack.i.h.bf16 %v1576_v45 }
 0x23d   : > { %479 = vmatpush.msra.mxu2 %v1577_v46 }
 0x23f   : > { %v1581_v48 = vpop.permute.xlu1 %1580  ;;  %480 = vmatpush.msra.mxu2 %v1578_v47 }
 0x240   : > { %v1582_v49 = vunpack.i.l.bf16 %v1581_v48  ;;  %v1583_v50 = vunpack.i.h.bf16 %v1581_v48 }
 0x242   : > { %564 = vmatpush.msra.mxu3 %v1582_v49 }
 0x244   : > { %565 = vmatpush.msra.mxu3 %v1583_v50 }
 0x265   : > { %v362_v51 = vpop.xlane.xlu0 %361 }
 0x266   : > { %v366_v52 = vsub.f32 %v358_v6, %v362_v51 }
 0x268   : > { %v368_v53 = vmul.f32 1.442695, %v366_v52 }
 0x26a   : > { %1657 = vpow2.f32 %v368_v53  ;;  %v365_v54 = vpop.xlane.xlu1 %364  ;;  %v1642_v53 = vld [vmem:[%s2089_s4] ss:$0 sm:$0xff] }
 0x26b   : > { %v367_v55 = vsub.f32 %v359_v11, %v365_v54 }
 0x26d   : > { %v370_v56 = vmul.f32 1.442695, %v367_v55 }
 0x26f   : > { %1659 = vpow2.f32 %v370_v56 }
 0x270   : > { %v1658_v57 = vpop.eup %1657 }
 0x271   : > { %v372_v58 = vsel %vm271_vm0, %v1658_v57, 0.0 }
 0x272   : > { %373 = vadd.xlane.f32.xlu2 %v372_v58 }
 0x275   : > { %v1660_v59 = vpop.eup %1659 }
 0x276   : > { %v375_v60 = vsel %vm271_vm0, %v1660_v59, 0.0 }
 0x277   : > { %376 = vadd.xlane.f32.xlu0 %v375_v60 }
 0x28a   : > { %674 = vperm.xlu2 %1594, %v671_v33  }
 0x292   : > { %1601 = vset.pattern.permute.xlu2 %v1739_v2 }
 0x297   : > { %v530_v61 = vpop.xlane.xlu1 %529 }
 0x298   : > { %1661 = vrcp.f32 %v530_v61  ;;  %v445_v62 = vpop.xlane.xlu0 %444 }
 0x299   : > { %1663 = vrcp.f32 %v445_v62 }
 0x29e   : > { %v1662_v63 = vpop.eup %1661 }
 0x29f   : > { %v1664_v3 = vpop.eup %1663  ;;  %v536_v4 = vmul.f32 %v1662_v63, %v1646_v24  ;;  %v1889_v24 = vpack.i.bf16 %v693_v21, %v694_v22 }
 0x2a0   : > { %v448_v6 = vpop.xlane.xlu1 %447  ;;  %v615_v7 = vpop.xlane.xlu0 %614  ;;  %v451_v10 = vmul.f32 %v1664_v3, %v1648_v27 }
 0x2a1   : > { %1665 = vrcp.f32 %v448_v6  ;;  %1509 = vmatmul.msk.f32.vlgmr.msra.gmra.mxu3 %vm271_vm0, %v536_v4  ;;  %1590 = vrot.lane.b32.xlu0 %v1889_v24, %s1747_s14 }
 0x2a2   : > { %1667 = vrcp.f32 %v615_v7  ;;  %1507 = vmatmul.msk.f32.vlgmr.msra.gmra.mxu2 %vm271_vm0, %v451_v10 }
 0x2a7   : > { %v1666_v11 = vpop.eup %1665 }
 0x2a8   : > { %v1668_v12 = vpop.eup %1667  ;;  %v533_v13 = vpop.xlane.xlu1 %532  ;;  %v452_v15 = vmul.f32 %v1666_v11, %v1652_v38 }
 0x2a9   : > { %v618_v14 = vpop.xlane.xlu0 %617  ;;  %1669 = vrcp.f32 %v533_v13  ;;  %v621_v16 = vmul.f32 %v1668_v12, %v1650_v34 }
 0x2aa   : > { %1671 = vrcp.f32 %v618_v14  ;;  %1508 = vmatmul.msk.f32.gmra.mxu2 %vm271_vm0, %v452_v15 }
 0x2ab   : > { %1511 = vmatmul.msk.f32.vlgmr.msrb.gmra.mxu0 %vm271_vm0, %v621_v16 }
 0x2af   : > { %v1670_v17 = vpop.eup %1669 }
 0x2b0   : > { %v1672_v18 = vpop.eup %1671  ;;  %v537_v19 = vmul.f32 %v1670_v17, %v1656_v42  ;;  %v1595_v42 = vpack.i.bf16 %v1804_v1, %v1799_v0 }
 0x2b1   : > { %v622_v20 = vmul.f32 %v1672_v18, %v1654_v41  ;;  %v264_v41 = vld [vmem:[%s257_s17 + $0x8] sm:$0xff] }
 0x2b2   : > { %1510 = vmatmul.msk.f32.gmra.mxu3 %vm271_vm0, %v537_v19  ;;  %vm266_vm4 = vcmp.gt.f32.partialorder %v264_v41, 0.0 }
 0x2b3   : > { %1512 = vmatmul.msk.f32.gmra.mxu0 %vm271_vm0, %v622_v20  ;;  %v672_v2 = vsel %vm266_vm4, 1, %v1748_v31  ;;  %vm1370_vm4 = vcmask 7168  }
 0x2e5   : > { %v374_v25 = vpop.xlane.xlu2 %373 }
 0x2e6   : > { %1673 = vrcp.f32 %v374_v25 }
 0x2ea   : > { %v377_v26 = vpop.xlane.xlu0 %376 }
 0x2eb   : > { %1675 = vrcp.f32 %v377_v26 }
 0x2ec   : > { %v1674_v27 = vpop.eup %1673 }
 0x2ed   : > { %v380_v28 = vmul.f32 %v1674_v27, %v1658_v57  ;;  %v1920_v50 = vpop.permute.xlu2 %674 }
 0x2ee   : > { %vm679_vm9 = vcmp.eq.s32.totalorder %v1920_v50, 1 }
 0x2ef   : > { %1505 = vmatmul.msk.f32.vlgmr.msrb.gmra.mxu1 %vm271_vm0, %v380_v28 }
 0x2f1   : > { %v1676_v29 = vpop.eup %1675 }
 0x2f2   : > { %v381_v30 = vmul.f32 %v1676_v29, %v1660_v59 }
 0x2f7   : > { %1506 = vmatmul.msk.f32.gmra.mxu1 %vm271_vm0, %v381_v30 }
 0x313   : > { %v1591_v43 = vpop.permute.xlu0 %1590 }
 0x314   : > { %v1593_v44 = vunpack.i.h.bf16 %v1591_v43  ;;  %v1592_v45 = vunpack.i.l.bf16 %v1591_v43 }
 0x316   : > { %730 = vmatpush.msra.mxu1 %v1592_v45 }
 0x318   : > { %731 = vmatpush.msra.mxu1 %v1593_v44 }
 0x324   : > { %v567_v37 = vpop.f32.mrf.mxu3 }
 0x325   : > { %v482_v34 = vpop.f32.mrf.mxu2 }
 0x326   : > { %490 = vrot.lane.b32.xlu1 %v482_v34, %s1749_s20 }
 0x328   : > { %v652_v36 = vpop.f32.mrf.mxu0 }
 0x329   : > { %660 = vrot.lane.b32.xlu0 %v652_v36, %s1750_s21 }
 0x32d   : > { %v485_v38 = vpop.f32.mrf.mxu2 }
 0x32e   : > { %492 = vrot.lane.b32.xlu1 %v485_v38, %s1749_s20 }
 0x330   : > { %v655_v40 = vpop.f32.mrf.mxu0 }
 0x331   : > { %575 = vrot.lane.b32.xlu0 %v567_v37, %s1751_s22 }
 0x335   : > { %v570_v39 = vpop.f32.mrf.mxu3 }
 0x336   : > { %577 = vrot.lane.b32.xlu1 %v570_v39, %s1751_s22 }
 0x339   : > { %662 = vrot.lane.b32.xlu0 %v655_v40, %s1750_s21 }
 0x33e   : > { %1596 = vrot.lane.b32.xlu1 %v1595_v42, %s1747_s14 }
 0x341   : > { %677 = vperm.xlu0 %1600, %v672_v2  }
 0x349   : > { %1602 = vset.pattern.permute.xlu0 %v1740_v5 }
 0x36c   : > { %v405_v46 = vpop.f32.mrf.mxu1 }
 0x36d   : > { %412 = vst.msk [vmem:[#allocation2] sm:$0xff] %vm411_vm5, %v405_v46 }
 0x374   : > { %v408_v47 = vpop.f32.mrf.mxu1 }
 0x375   : > { %413 = vst.msk [vmem:[#allocation2 + $0x8] sm:$0xff] %vm411_vm5, %v408_v47 }
 0x398   : > { %v491_v0 = vpop.permute.xlu1 %490 }
 0x399   : > { %497 = vst.msk [vmem:[#allocation2] sm:$0xff] %vm496_vm6, %v491_v0 }
 0x39b   : > { %v661_v1 = vpop.permute.xlu0 %660 }
 0x3a0   : > { %v493_v48 = vpop.permute.xlu1 %492 }
 0x3a1   : > { %498 = vst.msk [vmem:[#allocation2 + $0x8] sm:$0xff] %vm496_vm6, %v493_v48 }
 0x3a3   : > { %v576_v49 = vpop.permute.xlu0 %575 }
 0x3a4   : > { %582 = vst.msk [vmem:[#allocation2] sm:$0xff] %vm581_vm7, %v576_v49 }
 0x3a5   : > { %667 = vst.msk [vmem:[#allocation2] sm:$0xff] %vm666_vm8, %v661_v1 }
 0x3a8   : > { %v578_v51 = vpop.permute.xlu1 %577 }
 0x3a9   : > { %583 = vst.msk [vmem:[#allocation2 + $0x8] sm:$0xff] %vm581_vm7, %v578_v51 }
 0x3ab   : > { %v663_v52 = vpop.permute.xlu0 %662 }
 0x3ac   : > { %v669_v54 = vld [vmem:[#allocation2] sm:$0xff]  ;;  %668 = vst.msk [vmem:[#allocation2 + $0x8] sm:$0xff] %vm666_vm8, %v663_v52 }
 0x3ad   : > { %v681_v55 = vsel %vm679_vm9, %v669_v54, 0.0 }
 0x3ae   : > { %v687_v56 = vadd.f32 %v1642_v53, %v681_v55 }
 0x3b0   : > { %v1597_v57 = vpop.permute.xlu1 %1596  ;;  %v689_v62 = vmax.f32 %v687_v56, 0.0 }
 0x3b1   : > { %v1598_v58 = vunpack.i.l.bf16 %v1597_v57  ;;  %v1599_v59 = vunpack.i.h.bf16 %v1597_v57 }
 0x3b3   : > { %v1930_v60 = vpop.permute.xlu0 %677  ;;  %v670_v61 = vld [vmem:[#allocation2 + $0x8] sm:$0xff]  ;;  %732 = vmatpush.msra.mxu1 %v1598_v58 }
 0x3b4   : > { %vm680_vm11 = vcmp.eq.s32.totalorder %v1930_v60, 1 }
 0x3b5   : > { %v682_v63 = vsel %vm680_vm11, %v670_v61, 0.0  ;;  %733 = vmatpush.msra.mxu1 %v1599_v59 }
 0x3b6   : > { %1513 = vmatmul.msk.f32.vlgmr.msra.gmra.mxu1 %vm711_vm10, %v689_v62  ;;  %v688_v3 = vadd.f32 %v1642_v53, %v682_v63 }
 0x3b8   : > { %v690_v4 = vmax.f32 %v688_v3, 0.0 }
 0x3be   : > { %1514 = vmatmul.msk.f32.gmra.mxu1 %vm711_vm10, %v690_v4 }
 0x433   : > { %v735_v6 = vpop.f32.mrf.mxu1 }
 0x434   : > { %936 = vperm.xlu0 %1602, %v735_v6   ;;  %852 = vperm.xlu2 %1601, %v735_v6  }
 0x435   : > { %743 = vrot.lane.b32.xlu1 %v735_v6, %s1741_s28 }
 0x43b   : > { %v738_v7 = vpop.f32.mrf.mxu1 }
 0x43c   : > { %1603 = vset.pattern.permute.xlu2 %v1742_v8  ;;  %840 = vmatpush.msrb.mxu2 %v738_v7  ;;  %v1608_v46 = vpack.i.bf16 %v735_v6, %v738_v7 }
 0x43d   : > { %745 = vrot.lane.b32.xlu1 %v738_v7, %s1741_s28  ;;  %1020 = vperm.xlu2 %1603, %v735_v6   ;;  %s1753_s28 = smov 96  }
 0x43e   : > { %841 = vmatpush.msrb.mxu2 %v735_v6 }
 0x445   : > { %856 = vperm.xlu1 %1604, %v738_v7   ;;  %1024 = vperm.xlu2 %1603, %v738_v7  }
 0x44d   : > { %1605 = vset.pattern.permute.xlu1 %v1740_v5  ;;  %1607 = vset.pattern.permute.xlu2 %v1743_v9 }
 0x44e   : > { %940 = vperm.xlu1 %1605, %v738_v7   ;;  %786 = vperm.xlu2 %1607, %v738_v7  }
 0x456   : > { %1606 = vset.pattern.permute.xlu1 %v1743_v9 }
 0x457   : > { %782 = vperm.xlu1 %1606, %v735_v6  }
 0x48e   : > { %v853_v17 = vpop.permute.xlu2 %852 }
 0x497   : > { %v1021_v47 = vpop.permute.xlu2 %1020 }
 0x49f   : > { %v1025_v49 = vpop.permute.xlu2 %1024 }
 0x4a6   : > { %v937_v12 = vpop.permute.xlu0 %936 }
 0x4a7   : > { %v744_v10 = vpop.permute.xlu1 %743 }
 0x4a8   : > { %749 = vxpose.xlu0.b32.start [1/2] (short) (narrow) %v744_v10, 8  ;;  %v787_v55 = vpop.permute.xlu2 %786 }
 0x4af   : > { %v746_v11 = vpop.permute.xlu1 %745 }
 0x4b0   : > { %750 = vxpose.xlu0.b32.end [2/2] (short) (narrow) %v746_v11, 8 }
 0x4b7   : > { %v857_v8 = vpop.permute.xlu1 %856 }
 0x4c0   : > { %v941_v13 = vpop.permute.xlu1 %940 }
 0x4c9   : > { %v783_v34 = vpop.permute.xlu1 %782 }
 0x54c   : > { %v765_v14 = vpop.trf.xlu0 }
 0x54d   : > { %v859_v15 = vperm.slane %v765_v14, 1  ;;  %v943_v16 = vperm.slane %v765_v14, 2  ;;  %v789_v9 = vperm.slane %v765_v14, 0  ;;  %v1027_v0 = vperm.slane %v765_v14, 3 }
 0x54f   : > { %v944_v18 = vadd.f32 %v943_v16, %v937_v12  ;;  %v860_v5 = vadd.f32 %v859_v15, %v853_v17  ;;  %v861_v19 = vadd.f32 %v859_v15, %v857_v8  ;;  %v945_v20 = vadd.f32 %v943_v16, %v941_v13 }
 0x550   : > { %v790_v40 = vadd.f32 %v789_v9, %v783_v34  ;;  %v1028_v1 = vadd.f32 %v1027_v0, %v1021_v47  ;;  %v1029_v52 = vadd.f32 %v1027_v0, %v1025_v49  ;;  %v791_v58 = vadd.f32 %v789_v9, %v787_v55 }
 0x551   : > { %v946_v21 = vmul.f32 0.2, %v944_v18  ;;  %v862_v22 = vmul.f32 0.2, %v860_v5  ;;  %v863_v25 = vmul.f32 0.2, %v861_v19 }
 0x552   : > { %v947_v29 = vmul.f32 0.2, %v945_v20  ;;  %v792_v42 = vmul.f32 0.2, %v790_v40  ;;  %v1030_v48 = vmul.f32 0.2, %v1028_v1 }
 0x553   : > { %v948_v26 = vmax.f32 %v944_v18, %v946_v21  ;;  %v864_v27 = vmax.f32 %v860_v5, %v862_v22  ;;  %v865_v28 = vmax.f32 %v861_v19, %v863_v25  ;;  %v1031_v54 = vmul.f32 0.2, %v1029_v52 }
 0x554   : > { %v949_v39 = vmax.f32 %v945_v20, %v947_v29  ;;  %v794_v43 = vmax.f32 %v790_v40, %v792_v42  ;;  %v1032_v51 = vmax.f32 %v1028_v1, %v1030_v48  ;;  %v793_v61 = vmul.f32 0.2, %v791_v58 }
 0x555   : > { %v950_v30 = vsel %vm356_vm1, %v948_v26, -1e+30  ;;  %v866_v32 = vsel %vm356_vm1, %v864_v27, -1e+30  ;;  %v867_v33 = vsel %vm357_vm2, %v865_v28, -1e+30  ;;  %v1033_v57 = vmax.f32 %v1029_v52, %v1031_v54 }
 0x556   : > { %v952_v36 = vsel %vm271_vm0, %v950_v30, -inf  ;;  %v868_v37 = vsel %vm271_vm0, %v866_v32, -inf  ;;  %v871_v38 = vsel %vm271_vm0, %v867_v33, -inf  ;;  %v1954_v41 = vsel %vm357_vm2, %v949_v39, -1e+30 }
 0x557   : > { %953 = vmax.xlane.f32.xlu2 %v952_v36  ;;  %869 = vmax.xlane.f32.xlu1 %v868_v37  ;;  %v955_v2 = vsel %vm271_vm0, %v1954_v41, -inf  ;;  %v796_v44 = vsel %vm356_vm1, %v794_v43, -1e+30  ;;  %v1034_v53 = vsel %vm356_vm1, %v1032_v51, -1e+30  ;;  %v795_v63 = vmax.f32 %v791_v58, %v793_v61 }
 0x558   : > { %872 = vmax.xlane.f32.xlu0 %v871_v38  ;;  %v798_v45 = vsel %vm271_vm0, %v796_v44, -inf  ;;  %v1036_v56 = vsel %vm271_vm0, %v1034_v53, -inf  ;;  %v1035_v59 = vsel %vm357_vm2, %v1033_v57, -1e+30 }
 0x559   : > { %v1039_v62 = vsel %vm271_vm0, %v1035_v59, -inf  ;;  %v797_v3 = vsel %vm357_vm2, %v795_v63, -1e+30 }
 0x55a   : > { %v801_v4 = vsel %vm271_vm0, %v797_v3, -inf }
 0x55f   : > { %956 = vmax.xlane.f32.xlu2 %v955_v2 }
 0x567   : > { %799 = vmax.xlane.f32.xlu2 %v798_v45 }
 0x570   : > { %1609 = vrot.lane.b32.xlu1 %v1608_v46, %s1745_s8  ;;  %s1755_s8 = smov 111  }
 0x578   : > { %1614 = vrot.lane.b32.xlu1 %v1608_v46, %s1746_s9  ;;  %s1756_s9 = smov 30  }
 0x5a2   : > { %1037 = vmax.xlane.f32.xlu1 %v1036_v56 }
 0x5aa   : > { %1040 = vmax.xlane.f32.xlu1 %v1039_v62 }
 0x5b2   : > { %802 = vmax.xlane.f32.xlu1 %v801_v4 }
 0x5ca   : > { %v870_v6 = vpop.xlane.xlu1 %869  ;;  %v954_v10 = vpop.xlane.xlu2 %953 }
 0x5cb   : > { %v874_v7 = vsub.f32 %v866_v32, %v870_v6  ;;  %1619 = vrot.lane.b32.xlu1 %v1608_v46, %s1744_s29  ;;  %v958_v8 = vsub.f32 %v950_v30, %v954_v10  ;;  %v873_v13 = vpop.xlane.xlu0 %872 }
 0x5cc   : > { %v875_v16 = vsub.f32 %v867_v33, %v873_v13 }
 0x5cd   : > { %v876_v11 = vmul.f32 1.442695, %v874_v7  ;;  %v960_v12 = vmul.f32 1.442695, %v958_v8 }
 0x5ce   : > { %v878_v18 = vmul.f32 1.442695, %v875_v16 }
 0x5cf   : > { %1677 = vpow2.f32 %v876_v11 }
 0x5d0   : > { %1679 = vpow2.f32 %v960_v12 }
 0x5d1   : > { %1681 = vpow2.f32 %v878_v18 }
 0x5d2   : > { %v957_v14 = vpop.xlane.xlu2 %956 }
 0x5d3   : > { %v959_v38 = vsub.f32 %v1954_v41, %v957_v14 }
 0x5d5   : > { %v1973_v15 = vpop.eup %1677  ;;  %v962_v40 = vmul.f32 1.442695, %v959_v38 }
 0x5d6   : > { %v880_v17 = vsel %vm271_vm0, %v1973_v15, 0.0  ;;  %v1977_v5 = vpop.eup %1679 }
 0x5d7   : > { %881 = vadd.xlane.f32.xlu2 %v880_v17  ;;  %v964_v20 = vsel %vm271_vm0, %v1977_v5, 0.0  ;;  %v1682_v9 = vpop.eup %1681 }
 0x5d8   : > { %v883_v28 = vsel %vm271_vm0, %v1682_v9, 0.0 }
 0x5da   : > { %v800_v19 = vpop.xlane.xlu2 %799 }
 0x5db   : > { %v804_v22 = vsub.f32 %v796_v44, %v800_v19 }
 0x5dd   : > { %v806_v27 = vmul.f32 1.442695, %v804_v22 }
 0x5df   : > { %965 = vadd.xlane.f32.xlu2 %v964_v20  ;;  %1683 = vpow2.f32 %v806_v27 }
 0x5e2   : > { %v1610_v21 = vpop.permute.xlu1 %1609 }
 0x5e3   : > { %v1611_v25 = vunpack.i.l.bf16 %v1610_v21  ;;  %v1612_v26 = vunpack.i.h.bf16 %v1610_v21 }
 0x5e5   : > { %916 = vmatpush.msrb.mxu3 %v1611_v25  ;;  %v1684_v33 = vpop.eup %1683 }
 0x5e6   : > { %v810_v34 = vsel %vm271_vm0, %v1684_v33, 0.0 }
 0x5e7   : > { %917 = vmatpush.msrb.mxu3 %v1612_v26  ;;  %884 = vadd.xlane.f32.xlu2 %v883_v28 }
 0x5ea   : > { %v1615_v29 = vpop.permute.xlu1 %1614 }
 0x5eb   : > { %v1616_v30 = vunpack.i.l.bf16 %v1615_v29  ;;  %v1617_v32 = vunpack.i.h.bf16 %v1615_v29 }
 0x5ed   : > { %1000 = vmatpush.msra.mxu0 %v1616_v30  ;;  %v1117_v30 = vld [vmem:[%s2088_s3] sm:$0xff] }
 0x5ef   : > { %1001 = vmatpush.msra.mxu0 %v1617_v32  ;;  %v1118_v32 = vld [vmem:[%s2088_s3 + $0x8] sm:$0xff] }
 0x5f5   : > { %811 = vadd.xlane.f32.xlu1 %v810_v34 }
 0x60e   : > { %1624 = vrot.lane.b32.xlu1 %v1889_v24, %s1752_s25 }
 0x615   : > { %v1038_v36 = vpop.xlane.xlu1 %1037 }
 0x616   : > { %v1042_v37 = vsub.f32 %v1034_v53, %v1038_v36 }
 0x618   : > { %v1044_v39 = vmul.f32 1.442695, %v1042_v37 }
 0x61a   : > { %1685 = vpow2.f32 %v1044_v39 }
 0x61b   : > { %1687 = vpow2.f32 %v962_v40 }
 0x61d   : > { %v1041_v42 = vpop.xlane.xlu1 %1040 }
 0x61e   : > { %v1043_v43 = vsub.f32 %v1035_v59, %v1041_v42  ;;  %v1754_v42 = vmov 16  }
 0x61f   : > { %1633 = vset.pattern.permute.xlu2 %v1754_v42  ;;  %1634 = vset.pattern.permute.xlu0 %v1754_v42 }
 0x620   : > { %v1686_v2 = vpop.eup %1685  ;;  %v1046_v45 = vmul.f32 1.442695, %v1043_v43 }
 0x621   : > { %v1048_v44 = vsel %vm271_vm0, %v1686_v2, 0.0  ;;  %v1688_v47 = vpop.eup %1687 }
 0x622   : > { %1049 = vadd.xlane.f32.xlu2 %v1048_v44  ;;  %1689 = vpow2.f32 %v1046_v45  ;;  %v967_v1 = vsel %vm271_vm0, %v1688_v47, 0.0 }
 0x625   : > { %v803_v46 = vpop.xlane.xlu1 %802 }
 0x626   : > { %v805_v0 = vsub.f32 %v797_v3, %v803_v46 }
 0x628   : > { %v808_v48 = vmul.f32 1.442695, %v805_v0  ;;  %v1690_v41 = vpop.eup %1689 }
 0x629   : > { %v1051_v49 = vsel %vm271_vm0, %v1690_v41, 0.0 }
 0x62a   : > { %968 = vadd.xlane.f32.xlu2 %v967_v1  ;;  %1691 = vpow2.f32 %v808_v48 }
 0x630   : > { %v1692_v51 = vpop.eup %1691 }
 0x631   : > { %v813_v52 = vsel %vm271_vm0, %v1692_v51, 0.0 }
 0x632   : > { %1052 = vadd.xlane.f32.xlu2 %v1051_v49 }
 0x63a   : > { %814 = vadd.xlane.f32.xlu2 %v813_v52 }
 0x63d   : > { %v1620_v53 = vpop.permute.xlu1 %1619 }
 0x63e   : > { %v1621_v54 = vunpack.i.l.bf16 %v1620_v53  ;;  %v1622_v55 = vunpack.i.h.bf16 %v1620_v53 }
 0x640   : > { %1084 = vmatpush.msrb.mxu1 %v1621_v54 }
 0x642   : > { %1085 = vmatpush.msrb.mxu1 %v1622_v55 }
 0x64a   : > { %v882_v56 = vpop.xlane.xlu2 %881 }
 0x64b   : > { %1693 = vrcp.f32 %v882_v56 }
 0x651   : > { %v1694_v57 = vpop.eup %1693 }
 0x652   : > { %v966_v58 = vpop.xlane.xlu2 %965  ;;  %v888_v59 = vmul.f32 %v1694_v57, %v1973_v15 }
 0x653   : > { %1695 = vrcp.f32 %v966_v58 }
 0x654   : > { %1517 = vmatmul.msk.f32.vlgmr.msrb.gmra.mxu3 %vm271_vm0, %v888_v59 }
 0x659   : > { %v1696_v61 = vpop.eup %1695 }
 0x65a   : > { %v972_v62 = vmul.f32 %v1696_v61, %v1977_v5  ;;  %v885_v63 = vpop.xlane.xlu2 %884 }
 0x65b   : > { %1697 = vrcp.f32 %v885_v63 }
 0x65c   : > { %1519 = vmatmul.msk.f32.vlgmr.msra.gmra.mxu0 %vm271_vm0, %v972_v62 }
 0x661   : > { %v1698_v3 = vpop.eup %1697 }
 0x662   : > { %v889_v4 = vmul.f32 %v1698_v3, %v1682_v9  ;;  %v1643_v9 = vld [vmem:[%s2089_s4] ss:$0 sm:$0xff] }
 0x664   : > { %1518 = vmatmul.msk.f32.gmra.mxu3 %vm271_vm0, %v889_v4 }
 0x668   : > { %v812_v6 = vpop.xlane.xlu1 %811 }
 0x669   : > { %1699 = vrcp.f32 %v812_v6 }
 0x66f   : > { %v1700_v7 = vpop.eup %1699 }
 0x670   : > { %v818_v10 = vmul.f32 %v1700_v7, %v1684_v33  ;;  %v2016_v33 = vpack.i.bf16 %v1117_v30, %v1118_v32 }
 0x672   : > { %1515 = vmatmul.msk.f32.vlgmr.msrb.gmra.mxu2 %vm271_vm0, %v818_v10 }
 0x680   : > { %v1625_v37 = vpop.permute.xlu1 %1624 }
 0x681   : > { %v1627_v38 = vunpack.i.h.bf16 %v1625_v37  ;;  %v1626_v39 = vunpack.i.l.bf16 %v1625_v37 }
 0x683   : > { %1155 = vmatpush.msra.mxu2 %v1626_v39 }
 0x685   : > { %1156 = vmatpush.msra.mxu2 %v1627_v38 }
 0x695   : > { %v1050_v11 = vpop.xlane.xlu2 %1049 }
 0x696   : > { %1701 = vrcp.f32 %v1050_v11 }
 0x69c   : > { %v1702_v8 = vpop.eup %1701 }
 0x69d   : > { %v1056_v12 = vmul.f32 %v1702_v8, %v1686_v2  ;;  %v969_v13 = vpop.xlane.xlu2 %968 }
 0x69e   : > { %1703 = vrcp.f32 %v969_v13 }
 0x69f   : > { %1521 = vmatmul.msk.f32.vlgmr.msrb.gmra.mxu1 %vm271_vm0, %v1056_v12 }
 0x6a4   : > { %v1704_v14 = vpop.eup %1703 }
 0x6a5   : > { %v1053_v15 = vpop.xlane.xlu2 %1052  ;;  %v973_v16 = vmul.f32 %v1704_v14, %v1688_v47 }
 0x6a6   : > { %1705 = vrcp.f32 %v1053_v15 }
 0x6a7   : > { %1520 = vmatmul.msk.f32.gmra.mxu0 %vm271_vm0, %v973_v16 }
 0x6ac   : > { %v1706_v17 = vpop.eup %1705 }
 0x6ad   : > { %v815_v18 = vpop.xlane.xlu2 %814  ;;  %v1057_v5 = vmul.f32 %v1706_v17, %v1690_v41 }
 0x6ae   : > { %1707 = vrcp.f32 %v815_v18 }
 0x6af   : > { %1522 = vmatmul.msk.f32.gmra.mxu1 %vm271_vm0, %v1057_v5 }
 0x6b4   : > { %v1708_v24 = vpop.eup %1707 }
 0x6b5   : > { %v819_v19 = vmul.f32 %v1708_v24, %v1692_v51 }
 0x6b7   : > { %1516 = vmatmul.msk.f32.gmra.mxu2 %vm271_vm0, %v819_v19 }
 0x6d7   : > { %v919_v21 = vpop.f32.mrf.mxu3 }
 0x6d9   : > { %v1003_v20 = vpop.f32.mrf.mxu0 }
 0x6da   : > { %1011 = vrot.lane.b32.xlu2 %v1003_v20, %s1751_s22  ;;  %v1644_v20 = vld [vmem:[%s2089_s4] ss:$0 sm:$0xff] }
 0x6e2   : > { %927 = vrot.lane.b32.xlu2 %v919_v21, %s1749_s20 }
 0x6e7   : > { %v922_v28 = vpop.f32.mrf.mxu3 }
 0x6f5   : > { %v843_v22 = vpop.f32.mrf.mxu2 }
 0x6f6   : > { %849 = vst.msk [vmem:[#allocation2] sm:$0xff] %vm411_vm5, %v843_v22 }
 0x71c   : > { %v1087_v25 = vpop.f32.mrf.mxu1 }
 0x71d   : > { %1095 = vrot.lane.b32.xlu0 %v1087_v25, %s1750_s21 }
 0x724   : > { %v1006_v26 = vpop.f32.mrf.mxu0 }
 0x725   : > { %1013 = vrot.lane.b32.xlu2 %v1006_v26, %s1751_s22  ;;  %1110 = vrot.lane.b32.xlu0 %v1643_v9, %s1753_s28 }
 0x72c   : > { %v1090_v27 = vpop.f32.mrf.mxu1 }
 0x72d   : > { %1097 = vrot.lane.b32.xlu2 %v1090_v27, %s1750_s21 }
 0x734   : > { %v1012_v29 = vpop.permute.xlu2 %1011 }
 0x735   : > { %929 = vrot.lane.b32.xlu2 %v922_v28, %s1749_s20 }
 0x73a   : > { %v846_v34 = vpop.f32.mrf.mxu2 }
 0x73b   : > { %850 = vst.msk [vmem:[#allocation2 + $0x8] sm:$0xff] %vm411_vm5, %v846_v34 }
 0x73c   : > { %v928_v36 = vpop.permute.xlu2 %927 }
 0x73d   : > { %1629 = vrot.lane.b32.xlu2 %v2016_v33, %s1752_s25  ;;  %933 = vst.msk [vmem:[#allocation2] sm:$0xff] %vm496_vm6, %v928_v36 }
 0x73e   : > { %1017 = vst.msk [vmem:[#allocation2] sm:$0xff] %vm581_vm7, %v1012_v29 }
 0x77f   : > { %v1014_v40 = vpop.permute.xlu2 %1013 }
 0x787   : > { %v1098_v2 = vpop.permute.xlu2 %1097 }
 0x78f   : > { %v1096_v43 = vpop.permute.xlu0 %1095  ;;  %v930_v44 = vpop.permute.xlu2 %929 }
 0x790   : > { %1101 = vst.msk [vmem:[#allocation2] sm:$0xff] %vm666_vm8, %v1096_v43 }
 0x791   : > { %934 = vst.msk [vmem:[#allocation2 + $0x8] sm:$0xff] %vm496_vm6, %v930_v44  ;;  %vm1419_vm6 = vcmask 122880  }
 0x792   : > { %1018 = vst.msk [vmem:[#allocation2 + $0x8] sm:$0xff] %vm581_vm7, %v1014_v40 }
 0x793   : > { %1102 = vst.msk [vmem:[#allocation2 + $0x8] sm:$0xff] %vm666_vm8, %v1098_v2 }
 0x797   : > { %v1630_v45 = vpop.permute.xlu2 %1629  ;;  %v1111_v46 = vpop.permute.xlu0 %1110  ;;  %v1103_v47 = vld [vmem:[#allocation2] sm:$0xff] }
 0x798   : > { %v1631_v0 = vunpack.i.l.bf16 %v1630_v45  ;;  %v1105_v1 = vsel %vm679_vm9, %v1103_v47, 0.0  ;;  %v1632_v41 = vunpack.i.h.bf16 %v1630_v45 }
 0x799   : > { %v1113_v48 = vadd.f32 %v1111_v46, %v1105_v1 }
 0x79a   : > { %v1104_v49 = vld [vmem:[#allocation2 + $0x8] sm:$0xff]  ;;  %1157 = vmatpush.msra.mxu2 %v1631_v0 }
 0x79b   : > { %v1115_v51 = vmax.f32 %v1113_v48, 0.0  ;;  %v1106_v52 = vsel %vm680_vm11, %v1104_v49, 0.0 }
 0x79c   : > { %1158 = vmatpush.msra.mxu2 %v1632_v41  ;;  %v1114_v53 = vadd.f32 %v1111_v46, %v1106_v52 }
 0x79d   : > { %1523 = vmatmul.msk.f32.vlgmr.msra.gmra.mxu2 %vm711_vm10, %v1115_v51 }
 0x79e   : > { %v1116_v54 = vmax.f32 %v1114_v53, 0.0 }
 0x7a5   : > { %1524 = vmatmul.msk.f32.gmra.mxu2 %vm711_vm10, %v1116_v54 }
 0x820   : > { %v1160_v55 = vpop.f32.mrf.mxu2 }
 0x821   : > { %1207 = vperm.xlu2 %1633, %v1160_v55   ;;  %1168 = vrot.lane.b32.xlu0 %v1160_v55, %s1755_s8 }
 0x828   : > { %v1163_v56 = vpop.f32.mrf.mxu2 }
 0x829   : > { %1211 = vperm.xlu0 %1634, %v1163_v56   ;;  %1170 = vrot.lane.b32.xlu1 %v1163_v56, %s1755_s8 }
 0x82a   : > { %1265 = vmatpush.msra.mxu3 %v1163_v56  ;;  %1641 = vset.pattern.permute.xlu2 %v1748_v31 }
 0x82c   : > { %1266 = vmatpush.msra.mxu3 %v1160_v55 }
 0x831   : > { %1640 = vset.pattern.permute.xlu0 %v1748_v31 }
 0x87b   : > { %v1208_v62 = vpop.permute.xlu2 %1207 }
 0x893   : > { %v1169_v57 = vpop.permute.xlu0 %1168 }
 0x894   : > { %1174 = vxpose.xlu1.b32.start [1/2] (short) (narrow) %v1169_v57, 8 }
 0x89b   : > { %v1171_v58 = vpop.permute.xlu1 %1170  ;;  %v1212_v63 = vpop.permute.xlu0 %1211 }
 0x89c   : > { %1175 = vxpose.xlu1.b32.end [2/2] (short) (narrow) %v1171_v58, 8 }
 0x8f6   : > { %1636 = vrot.lane.b32.xlu1 %v2016_v33, %s1756_s9 }
 0x938   : > { %v1190_v59 = vpop.trf.xlu1 }
 0x939   : > { %v1214_v61 = vperm.slane %v1190_v59, 0 }
 0x93b   : > { %v1215_v3 = vadd.f32 %v1214_v61, %v1208_v62  ;;  %v1216_v4 = vadd.f32 %v1214_v61, %v1212_v63 }
 0x93d   : > { %v1217_v6 = vmul.f32 0.2, %v1215_v3  ;;  %v1218_v7 = vmul.f32 0.2, %v1216_v4 }
 0x93f   : > { %v1220_v10 = vmax.f32 %v1216_v4, %v1218_v7  ;;  %v1219_v11 = vmax.f32 %v1215_v3, %v1217_v6 }
 0x941   : > { %v1222_v8 = vsel %vm357_vm2, %v1220_v10, -1e+30  ;;  %v1221_v31 = vsel %vm356_vm1, %v1219_v11, -1e+30 }
 0x942   : > { %v1226_v12 = vsel %vm271_vm0, %v1222_v8, -inf  ;;  %v1223_v13 = vsel %vm271_vm0, %v1221_v31, -inf }
 0x943   : > { %1227 = vmax.xlane.f32.xlu0 %v1226_v12  ;;  %1224 = vmax.xlane.f32.xlu2 %v1223_v13 }
 0x957   : > { %1283 = vrot.lane.b32.xlu0 %v1644_v20, %s1757_s12 }
 0x968   : > { %v1637_v22 = vpop.permute.xlu1 %1636 }
 0x969   : > { %v1639_v25 = vunpack.i.h.bf16 %v1637_v22  ;;  %v1638_v9 = vunpack.i.l.bf16 %v1637_v22 }
 0x96b   : > { %1323 = vmatpush.msrb.mxu0 %v1638_v9 }
 0x96d   : > { %1324 = vmatpush.msrb.mxu0 %v1639_v25 }
 0x9b6   : > { %v1225_v14 = vpop.xlane.xlu2 %1224  ;;  %v1228_v15 = vpop.xlane.xlu0 %1227 }
 0x9b7   : > { %v1229_v16 = vsub.f32 %v1221_v31, %v1225_v14  ;;  %v1230_v18 = vsub.f32 %v1222_v8, %v1228_v15 }
 0x9b9   : > { %v1231_v17 = vmul.f32 1.442695, %v1229_v16  ;;  %v1233_v5 = vmul.f32 1.442695, %v1230_v18 }
 0x9bb   : > { %1709 = vpow2.f32 %v1231_v17 }
 0x9bc   : > { %1711 = vpow2.f32 %v1233_v5 }
 0x9c1   : > { %v1710_v24 = vpop.eup %1709 }
 0x9c2   : > { %v1235_v35 = vsel %vm271_vm0, %v1710_v24, 0.0  ;;  %v1712_v23 = vpop.eup %1711 }
 0x9c3   : > { %1236 = vadd.xlane.f32.xlu2 %v1235_v35  ;;  %v1238_v19 = vsel %vm271_vm0, %v1712_v23, 0.0 }
 0x9c9   : > { %v1284_v33 = vpop.permute.xlu0 %1283 }
 0x9cb   : > { %1239 = vadd.xlane.f32.xlu2 %v1238_v19 }
 0x9e3   : > { %1300 = vrot.lane.b32.xlu2 %v1644_v20, %s1752_s25 }
 0xa36   : > { %v1237_v21 = vpop.xlane.xlu2 %1236 }
 0xa37   : > { %1713 = vrcp.f32 %v1237_v21 }
 0xa3d   : > { %v1714_v26 = vpop.eup %1713 }
 0xa3e   : > { %v1243_v27 = vmul.f32 %v1714_v26, %v1710_v24  ;;  %v1240_v28 = vpop.xlane.xlu2 %1239 }
 0xa3f   : > { %1715 = vrcp.f32 %v1240_v28 }
 0xa40   : > { %1525 = vmatmul.msk.f32.vlgmr.msra.gmra.mxu3 %vm271_vm0, %v1243_v27 }
 0xa45   : > { %v1716_v29 = vpop.eup %1715 }
 0xa46   : > { %v1244_v30 = vmul.f32 %v1716_v29, %v1712_v23  ;;  %v1301_v50 = vpop.permute.xlu2 %1300 }
 0xa48   : > { %1526 = vmatmul.msk.f32.gmra.mxu3 %vm271_vm0, %v1244_v30 }
 0xac3   : > { %v1268_v32 = vpop.f32.mrf.mxu3 }
 0xac4   : > { %1274 = vst.msk [vmem:[#allocation2] sm:$0xff] %vm271_vm0, %v1268_v32 }
 0xacb   : > { %v1271_v34 = vpop.f32.mrf.mxu3  ;;  %v1276_v36 = vld [vmem:[#allocation2] sm:$0xff] }
 0xacc   : > { %1275 = vst.msk [vmem:[#allocation2 + $0x8] sm:$0xff] %vm271_vm0, %v1271_v34  ;;  %v1278_v37 = vsel %vm679_vm9, %v1276_v36, 0.0 }
 0xacd   : > { %v2054_v38 = vadd.f32 %v1284_v33, %v1278_v37 }
 0xacf   : > { %v1288_v39 = vmax.f32 %v2054_v38, 0.0 }
 0xad1   : > { %1527 = vmatmul.msk.f32.vlgmr.msrb.gmra.mxu0 %vm271_vm0, %v1288_v39 }
 0xad3   : > { %v1277_v40 = vld [vmem:[#allocation2 + $0x8] sm:$0xff] }
 0xad4   : > { %v1279_v42 = vsel %vm680_vm11, %v1277_v40, 0.0 }
 0xad5   : > { %v2062_v2 = vadd.f32 %v1284_v33, %v1279_v42 }
 0xad7   : > { %v1289_v43 = vmax.f32 %v2062_v2, 0.0 }
 0xad9   : > { %1528 = vmatmul.msk.f32.gmra.mxu0 %vm271_vm0, %v1289_v43 }
 0xb4e   : > { %v1326_v44 = vpop.f32.mrf.mxu0 }
 0xb4f   : > { %v1327_v45 = vadd.f32 %v1326_v44, %v1301_v50 }
 0xb51   : > { %v1529_v46 = vmul.f32 -1.442695, %v1327_v45 }
 0xb53   : > { %1717 = vpow2.f32 %v1529_v46 }
 0xb56   : > { %v1329_v47 = vpop.f32.mrf.mxu0 }
 0xb57   : > { %v1330_v0 = vadd.f32 %v1329_v47, %v1301_v50 }
 0xb59   : > { %v1718_v1 = vpop.eup %1717  ;;  %v1530_v48 = vmul.f32 -1.442695, %v1330_v0 }
 0xb5a   : > { %v1338_v41 = vadd.f32 1.0, %v1718_v1 }
 0xb5b   : > { %1719 = vpow2.f32 %v1530_v48 }
 0xb5c   : > { %1721 = vrcp.f32 %v1338_v41  ;;  %v1351_v58 = vand.u32 2147483648, %v1338_v41  ;;  %vm1345_vm13 = vweird.f32 %v1338_v41  ;;  %v1349_v59 = vand.u32 2147483647, %v1338_v41 }
 0xb5e   : > { %v1352_v6 = vor.u32 1.1754944e-38, %v1351_v58  ;;  %vm1350_vm1 = vcmp.eq.f32.partialorder %v1349_v59, 8.507059e+37 }
 0xb61   : > { %v1720_v60 = vpop.eup %1719 }
 0xb62   : > { %v1722_v49 = vpop.eup %1721  ;;  %v1339_v51 = vadd.f32 1.0, %v1720_v60 }
 0xb63   : > { %v1341_v52 = vmul.f32 %v1722_v49, %v1338_v41  ;;  %vm1346_vm12 = vweird.f32 %v1722_v49 }
 0xb64   : > { %1723 = vrcp.f32 %v1339_v51  ;;  %vm1347_vm14 = vmor %vm1345_vm13, %vm1346_vm12  ;;  %v1366_v62 = vand.u32 2147483648, %v1339_v51  ;;  %v1364_v4 = vand.u32 2147483647, %v1339_v51  ;;  %vm1360_vm2 = vweird.f32 %v1339_v51 }
 0xb65   : > { %v1342_v53 = vsub.f32 1.0, %v1341_v52 }
 0xb66   : > { %v1367_v10 = vor.u32 1.1754944e-38, %v1366_v62  ;;  %vm1365_vm5 = vcmp.eq.f32.partialorder %v1364_v4, 8.507059e+37 }
 0xb67   : > { %v1343_v54 = vmul.f32 %v1722_v49, %v1342_v53 }
 0xb69   : > { %v1344_v56 = vadd.f32 %v1722_v49, %v1343_v54 }
 0xb6a   : > { %v1724_v55 = vpop.eup %1723 }
 0xb6b   : > { %v1356_v57 = vmul.f32 %v1724_v55, %v1339_v51  ;;  %v1348_v63 = vsel %vm1347_vm14, %v1722_v49, %v1344_v56  ;;  %vm1361_vm15 = vweird.f32 %v1724_v55 }
 0xb6c   : > { %vm1362_vm3 = vmor %vm1360_vm2, %vm1361_vm15  ;;  %v1353_v11 = vsel %vm1350_vm1, %v1352_v6, %v1348_v63 }
 0xb6d   : > { %v1357_v61 = vsub.f32 1.0, %v1356_v57  ;;  %v1371_v12 = vsel %vm1370_vm4, %v1353_v11, -inf }
 0xb6f   : > { %v1358_v3 = vmul.f32 %v1724_v55, %v1357_v61 }
 0xb71   : > { %v1359_v7 = vadd.f32 %v1724_v55, %v1358_v3 }
 0xb73   : > { %v1363_v8 = vsel %vm1362_vm3, %v1724_v55, %v1359_v7 }
 0xb74   : > { %v1368_v31 = vsel %vm1365_vm5, %v1367_v10, %v1363_v8 }
 0xb75   : > { %v1372_v13 = vsel %vm1370_vm4, %v1368_v31, -inf }
 0xb76   : > { %v1373_v14 = vmax.f32 %v1371_v12, %v1372_v13 }
 0xb78   : > { %v1374_v15 = vrot.slane %v1373_v14, 4 }
 0xb7a   : > { %v1375_v16 = vmax.f32 %v1373_v14, %v1374_v15 }
 0xb7c   : > { %v1376_v17 = vrot.slane %v1375_v16, 2 }
 0xb7e   : > { %v1377_v18 = vmax.f32 %v1375_v16, %v1376_v17 }
 0xb80   : > { %v1378_v5 = vrot.slane %v1377_v18, 1 }
 0xb82   : > { %v1379_v24 = vmax.f32 %v1377_v18, %v1378_v5 }
 0xb84   : > { %v1380_v35 = vsub.f32 %v1353_v11, %v1379_v24  ;;  %v1381_v23 = vsub.f32 %v1368_v31, %v1379_v24 }
 0xb86   : > { %v1382_v19 = vmul.f32 1.442695, %v1380_v35  ;;  %v1384_v20 = vmul.f32 1.442695, %v1381_v23 }
 0xb88   : > { %1725 = vpow2.f32 %v1382_v19 }
 0xb89   : > { %1727 = vpow2.f32 %v1384_v20 }
 0xb8e   : > { %v1726_v21 = vpop.eup %1725 }
 0xb8f   : > { %v1728_v22 = vpop.eup %1727  ;;  %v1386_v25 = vsel %vm1370_vm4, %v1726_v21, 0.0 }
 0xb90   : > { %v1387_v9 = vsel %vm1370_vm4, %v1728_v22, 0.0 }
 0xb91   : > { %v1388_v26 = vadd.f32 %v1387_v9, %v1386_v25 }
 0xb93   : > { %v1389_v27 = vrot.slane %v1388_v26, 4 }
 0xb95   : > { %v1390_v28 = vadd.f32 %v1389_v27, %v1388_v26 }
 0xb97   : > { %v1391_v29 = vrot.slane %v1390_v28, 2 }
 0xb99   : > { %v1392_v30 = vadd.f32 %v1391_v29, %v1390_v28 }
 0xb9b   : > { %v1393_v32 = vrot.slane %v1392_v30, 1 }
 0xb9d   : > { %v1394_v33 = vadd.f32 %v1393_v32, %v1392_v30 }
 0xb9f   : > { %1729 = vrcp.f32 %v1394_v33 }
 0xba5   : > { %v1730_v34 = vpop.eup %1729 }
 0xba6   : > { %v1397_v36 = vmul.f32 %v1730_v34, %v1728_v22  ;;  %v1396_v37 = vmul.f32 %v1730_v34, %v1726_v21 }
 0xba8   : > { %1405 = vperm.xlu2 %1641, %v1397_v36   ;;  %1400 = vperm.xlu0 %1640, %v1396_v37  }
 0xc02   : > { %v1406_v40 = vpop.permute.xlu2 %1405 }
 0xc03   : > { %v1409_v42 = vmul.f32 %v1406_v40, %v1289_v43 }
 0xc05   : > { %v1411_v45 = vsel %vm271_vm0, %v1409_v42, 0.0 }
 0xc1a   : > { %v1401_v50 = vpop.permute.xlu0 %1400 }
 0xc1b   : > { %v1408_v44 = vmul.f32 %v1401_v50, %v1288_v39 }
 0xc1d   : > { %v1410_v46 = vsel %vm271_vm0, %v1408_v44, 0.0 }
 0xc1e   : > { %v1412_v47 = vadd.f32 %v1411_v45, %v1410_v46 }
 0xc20   : > { %v1413_v0 = vrot.slane %v1412_v47, 4 }
 0xc22   : > { %v1414_v1 = vadd.f32 %v1413_v0, %v1412_v47 }
 0xc24   : > { %v1415_v48 = vrot.slane %v1414_v1, 2 }
 0xc26   : > { %v1416_v41 = vadd.f32 %v1415_v48, %v1414_v1 }
 0xc28   : > { %v1417_v60 = vrot.slane %v1416_v41, 1 }
 0xc2a   : > { %v1418_v2 = vadd.f32 %v1417_v60, %v1416_v41 }
 0xc2c   : > { %1420 = vst.msk [vmem:[%s260_s15] sm:$0x1] %vm1419_vm6, %v1418_v2 }
 0xc2d PF: > { %s15_s18 = sadd.s32 1, %s1737_s18  }
 0xc2e   : > { %p12_p4 = scmp.ge.s32.totalorder %s15_s18, 5  }
 0xc30   :  { %14 = sbr.rel (!%p12_p4) target bundleno = 1 (0x1), region = 76 }

</bundles_post_ra>
